<compile_context>
chip_gen: v5e
topology: v5e:2x2
jax: 0.10.0
libtpu: 0.0.40
codegen_flags: <defaults>
</compile_context>

<pallas_src>
import jax
import jax.numpy as jnp
from jax.experimental import pallas as pl
from jax.experimental.pallas import tpu as pltpu


# --------------------------------------------------------------------------
# Pallas kernel: one grid step == one batch element, everything in VMEM.
# --------------------------------------------------------------------------
def posterior_encoder_kernel(
    x_len_ref,                      # SMEM (B,) int32
    x_ref,                          # (1, T, Cin_p)  bf16
    noise_ref,                      # (1, T, Cp)     f32
    bias_in_ref,                    # (L, 1, 2Hp)    f32  (conv bias + cond(g))
    w_pre_ref, b_pre_ref,           # (Cin_p, Hp) bf16, (1, Hp) f32
    w_in_ref,                       # (L, K*Hp, 2Hp) bf16 (fused unfold weight)
    w_rs_ref, b_rs_ref,             # (L, Hp, 2Hp) bf16, (L, 1, 2Hp) f32
    w_post_ref, b_post_ref,         # (Hp, 2Cp) bf16, (1, 2Cp) f32
    out_ref,                        # (1, 3Cp, T) f32   [z | mean | logvar]
    hpad_ref,                       # VMEM (T + 2*pad, Hp) f32: residual + halos
    skip_ref,                       # VMEM (T, Hp) f32 scratch (skip sum)
):
    b = pl.program_id(0)
    T = x_ref.shape[1]
    Hp = w_pre_ref.shape[1]
    L = w_in_ref.shape[0]
    K = w_in_ref.shape[1] // Hp
    pad = (K - 1) // 2                      # dilation = 1
    Cp = noise_ref.shape[2]
    f32 = jnp.float32
    bf16 = jnp.bfloat16

    # ----- mask: arange(T) < x_length[b] ---------------------------------
    length = x_len_ref[b]
    t_idx = jax.lax.broadcasted_iota(jnp.int32, (T, 1), 0)
    mask = (t_idx < length).astype(f32)                     # (T, 1)

    # ----- pre 1x1 conv (bf16 matmul, f32 accumulate) ---------------------
    x = x_ref[0]                                            # (T, Cin_p) bf16
    h0 = (jnp.dot(x, w_pre_ref[...], preferred_element_type=f32)
          + b_pre_ref[...]) * mask                          # (T, Hp) f32

    # residual lives in the padded buffer; halo rows zeroed once per batch
    hpad_ref[0:pad, :] = jnp.zeros((pad, Hp), f32)
    hpad_ref[pad:pad + T, :] = h0
    hpad_ref[T + pad:T + 2 * pad, :] = jnp.zeros((pad, Hp), f32)
    skip_ref[...] = jnp.zeros_like(skip_ref)

    # ----- WaveNet stack --------------------------------------------------
    def layer(l, carry):
        # K shifted views; the center one IS the current residual (dilation=1)
        views = [hpad_ref[k:k + T, :] for k in range(K)]    # each (T, Hp) f32
        h = views[pad]
        # unfold along lanes -> (T, K*Hp); one MXU dot with K*Hp contraction
        x_unf = jnp.concatenate(views, axis=-1).astype(bf16)
        x_in = (jnp.dot(x_unf, w_in_ref[l], preferred_element_type=f32)
                + bias_in_ref[l])                           # (T, 2Hp) f32
        acts = jnp.tanh(x_in[:, :Hp]) * jax.nn.sigmoid(x_in[:, Hp:])  # (T, Hp)
        rs = (jnp.dot(acts.astype(bf16), w_rs_ref[l],
                      preferred_element_type=f32) + b_rs_ref[l])      # (T, 2Hp)
        # residual update in place (last layer's residual half is zero weights)
        hpad_ref[pad:pad + T, :] = (h + rs[:, :Hp]) * mask
        skip_ref[...] = skip_ref[...] + rs[:, Hp:]
        return carry

    jax.lax.fori_loop(0, L, layer, 0)

    # ----- post 1x1 conv, reparameterisation ------------------------------
    out = skip_ref[...] * mask                              # (T, Hp)
    stats = (jnp.dot(out.astype(bf16), w_post_ref[...],
                     preferred_element_type=f32)
             + b_post_ref[...]) * mask                      # (T, 2Cp)
    mean = stats[:, :Cp]
    logvar = stats[:, Cp:]
    z = mean + noise_ref[0] * jnp.exp(logvar) * mask

    # fused, channel-major (lane-dense in T for production lengths) output
    slab = jnp.concatenate([z, mean, logvar], axis=-1)      # (T, 3Cp)
    out_ref[0] = slab.T                                     # (3Cp, T)


# --------------------------------------------------------------------------
# Wrapper: padding / repacking of weights, layout glue, pallas_call.
# --------------------------------------------------------------------------
def _round_up(n, m):
    return ((n + m - 1) // m) * m


def posterior_encoder_forward(x, x_length, g, noise, p, *, lane=128):
    """x: (B, Cin, T) f32, x_length: (B,) int, g: (B, G, 1) f32, noise: (B, T, C) f32."""
    B, Cin, T = x.shape
    H = p["w_pre"].shape[1]
    L, K = p["w_in"].shape[:2]
    C = p["w_post"].shape[1] // 2
    pad_k = (K - 1) // 2

    Hp = _round_up(H, lane)
    Cp = _round_up(C, lane)
    Cin_p = _round_up(Cin, lane)
    twoHp = 2 * Hp

    f32, bf16 = jnp.float32, jnp.bfloat16

    def pad_to(a, shape):
        return jnp.pad(a, [(0, s - d) for s, d in zip(shape, a.shape)])

    # ---- weights: zero-pad channels (exact) and repack -------------------
    w_pre = pad_to(p["w_pre"], (Cin_p, Hp)).astype(bf16)
    b_pre = pad_to(p["b_pre"], (1, Hp)).astype(f32)

    # dilated-conv weights: pad each gate half, fuse (K, Hp) -> K*Hp rows
    w_in = jnp.concatenate(
        [pad_to(p["w_in"][..., :H], (L, K, Hp, Hp)),
         pad_to(p["w_in"][..., H:], (L, K, Hp, Hp))],
        axis=-1).reshape(L, K * Hp, twoHp).astype(bf16)

    w_rs = jnp.concatenate(
        [pad_to(p["w_rs"][..., :H], (L, Hp, Hp)),
         pad_to(p["w_rs"][..., H:], (L, Hp, Hp))], axis=-1).astype(bf16)
    b_rs = jnp.concatenate(
        [pad_to(p["b_rs"][..., :H], (L, 1, Hp)),
         pad_to(p["b_rs"][..., H:], (L, 1, Hp))], axis=-1).astype(f32)

    w_post = jnp.concatenate(
        [pad_to(p["w_post"][:, :C], (Hp, Cp)),
         pad_to(p["w_post"][:, C:], (Hp, Cp))], axis=-1).astype(bf16)
    b_post = jnp.concatenate(
        [pad_to(p["b_post"][:, :C], (1, Cp)),
         pad_to(p["b_post"][:, C:], (1, Cp))], axis=-1).astype(f32)

    # ---- conditioning hoisted out of the kernel loop ----------------------
    # g is constant over T, so cond(g) is just a per-(batch, layer) bias; fold
    # it together with the conv bias and feed one (B, L, 1, 2Hp) tensor.
    g_vec = jnp.squeeze(g, axis=-1)                                      # (B, G)
    cond = (jnp.einsum("bg,lgh->blh", g_vec, p["w_cond"])
            + p["b_cond"][None, :, 0, :])                                # (B, L, 2H)
    bias = p["b_in"][None, :, 0, :] + cond                               # (B, L, 2H)
    bias_in = jnp.concatenate(
        [pad_to(bias[..., :H], (B, L, Hp)),
         pad_to(bias[..., H:], (B, L, Hp))],
        axis=-1)[:, :, None, :].astype(f32)                              # (B, L, 1, 2Hp)

    # ---- activations: time-major, channel-padded, bf16 --------------------
    x_tm = pad_to(jnp.transpose(x, (0, 2, 1)), (B, T, Cin_p)).astype(bf16)
    noise_p = pad_to(noise, (B, T, Cp)).astype(f32)
    x_len = x_length.astype(jnp.int32)

    weights = [w_pre, b_pre, w_in, w_rs, b_rs, w_post, b_post]

    def full_spec(a):
        nd = a.ndim
        return pl.BlockSpec(a.shape, lambda b, _nd=nd: (0,) * _nd)

    in_specs = [
        pl.BlockSpec(memory_space=pltpu.MemorySpace.SMEM),            # x_length
        pl.BlockSpec((1, T, Cin_p), lambda b: (b, 0, 0)),             # x
        pl.BlockSpec((1, T, Cp), lambda b: (b, 0, 0)),                # noise
        pl.BlockSpec((None, L, 1, twoHp), lambda b: (b, 0, 0, 0)),    # bias_in (batch squeezed)
    ] + [full_spec(w) for w in weights]

    out_spec = pl.BlockSpec((1, 3 * Cp, T), lambda b: (b, 0, 0))
    out_shape = jax.ShapeDtypeStruct((B, 3 * Cp, T), f32)

    scratch_shapes = [
        pltpu.VMEM((T + 2 * pad_k, Hp), f32),   # padded conv input / residual
        pltpu.VMEM((T, Hp), f32),               # skip accumulator
    ]

    slab = pl.pallas_call(
        posterior_encoder_kernel,
        grid=(B,),
        in_specs=in_specs,
        out_specs=out_spec,
        out_shape=out_shape,
        scratch_shapes=scratch_shapes,
        compiler_params=pltpu.CompilerParams(
            dimension_semantics=("parallel",),      # independent batch -> megacore
            vmem_limit_bytes=32 * 1024 * 1024,
        ),
    )(x_len, x_tm, noise_p, bias_in, *weights)

    # outputs are already channel-major; just slice the padding off
    z = slab[:, 0:C, :]
    mean = slab[:, Cp:Cp + C, :]
    logvar = slab[:, 2 * Cp:2 * Cp + C, :]
    z_mask = (jnp.arange(T)[None, None, :] < x_len[:, None, None]).astype(f32)
    return z, mean, logvar, z_mask


# --------------------------------------------------------------------------
# Deterministic parameter init (synthetic; matches module's shapes).
# --------------------------------------------------------------------------
def make_params(key, cin, H, G, C, K, L):
    ks = jax.random.split(key, 10)
    s = 0.1
    w_pre = jax.random.normal(ks[0], (cin, H), jnp.float32) * s
    b_pre = jax.random.normal(ks[1], (1, H), jnp.float32) * s
    w_in = jax.random.normal(ks[2], (L, K, H, 2 * H), jnp.float32) * s
    b_in = jax.random.normal(ks[3], (L, 1, 2 * H), jnp.float32) * s
    w_cond = jax.random.normal(ks[4], (L, G, 2 * H), jnp.float32) * s
    b_cond = jax.random.normal(ks[5], (L, 1, 2 * H), jnp.float32) * s
    w_rs = jax.random.normal(ks[6], (L, H, 2 * H), jnp.float32) * s
    b_rs = jax.random.normal(ks[7], (L, 1, 2 * H), jnp.float32) * s
    # Last WN layer's res_skip conv only produces skip channels in torch;
    # encode that by zeroing the residual half of the last layer (real
    # checkpoints with an (H, H) last res_skip conv must be zero-padded).
    w_rs = w_rs.at[L - 1, :, :H].set(0.0)
    b_rs = b_rs.at[L - 1, :, :H].set(0.0)
    w_post = jax.random.normal(ks[8], (H, 2 * C), jnp.float32) * s
    b_post = jax.random.normal(ks[9], (1, 2 * C), jnp.float32) * s
    return dict(w_pre=w_pre, b_pre=b_pre, w_in=w_in, b_in=b_in,
                w_cond=w_cond, b_cond=b_cond, w_rs=w_rs, b_rs=b_rs,
                w_post=w_post, b_post=b_post)


# --------------------------------------------------------------------------
# Pure-JAX reference (time-major, same bf16-before-dot policy, un-fused conv)
# --------------------------------------------------------------------------
def reference(x_tm, x_length, g_tm, noise, p):
    f32, bf16 = jnp.float32, jnp.bfloat16
    B, T, _ = x_tm.shape
    H = p["w_pre"].shape[1]
    L, K = p["w_in"].shape[:2]
    pad = (K - 1) // 2

    def mm(a, w):  # bf16 matmul, f32 accumulation (mirrors kernel dtype policy)
        return jnp.einsum("...i,io->...o", a.astype(bf16), w.astype(bf16),
                          preferred_element_type=f32)

    mask = (jnp.arange(T)[None, :, None] < x_length[:, None, None]).astype(f32)
    h = (mm(x_tm, p["w_pre"]) + p["b_pre"]) * mask
    out = jnp.zeros_like(h)
    for l in range(L):
        hp = jnp.pad(h, ((0, 0), (pad, pad), (0, 0)))
        x_in = sum(mm(hp[:, k:k + T, :], p["w_in"][l, k]) for k in range(K)) + p["b_in"][l]
        g_l = jnp.einsum("btg,gh->bth", g_tm, p["w_cond"][l]) + p["b_cond"][l]
        s = x_in + g_l
        acts = jnp.tanh(s[..., :H]) * jax.nn.sigmoid(s[..., H:])
        rs = mm(acts, p["w_rs"][l]) + p["b_rs"][l]
        h = (h + rs[..., :H]) * mask
        out = out + rs[..., H:]
    out = out * mask
    stats = (mm(out, p["w_post"]) + p["b_post"]) * mask
    C = stats.shape[-1] // 2
    mean, logvar = stats[..., :C], stats[..., C:]
    z = mean + noise * jnp.exp(logvar) * mask
    tp = lambda a: jnp.transpose(a, (0, 2, 1))
    return tp(z), tp(mean), tp(logvar), tp(mask)


if __name__ == "__main__":
    # Small config consistent with the module (n_fft=62 -> input_channels=32).
    B, T = 2, 24
    Cin = 32        # n_fft // 2 + 1
    H = 32          # internal_channels
    G = 16          # speaker_embedding_dim
    C = 32          # content_channels
    K = 5           # kernel_size
    L = 4           # num_layers

    key = jax.random.PRNGKey(0)
    kp, kx, kg, kn = jax.random.split(key, 4)
    params = make_params(kp, Cin, H, G, C, K, L)

    x = jax.random.normal(kx, (B, Cin, T), jnp.float32)
    x_length = jnp.array([T, 17], jnp.int32)
    g = jax.random.normal(kg, (B, G, 1), jnp.float32)
    noise = jax.random.normal(kn, (B, T, C), jnp.float32)  # replaces torch.randn_like

    fwd = jax.jit(posterior_encoder_forward)
    z, mean, logvar, z_mask = jax.block_until_ready(fwd(x, x_length, g, noise, params))

    z_r, mean_r, logvar_r, mask_r = reference(
        jnp.transpose(x, (0, 2, 1)), x_length, jnp.transpose(g, (0, 2, 1)), noise, params)

    assert z.shape == (B, C, T) and mean.shape == (B, C, T)
    assert logvar.shape == (B, C, T) and z_mask.shape == (B, 1, T)
    for got, want in ((z, z_r), (mean, mean_r), (logvar, logvar_r), (z_mask, mask_r)):
        err = float(jnp.max(jnp.abs(got - want)))
        assert jnp.allclose(got, want, atol=1e-2, rtol=1e-2), err

    print("KERNEL_OK")
</pallas_src>

<mosaic_0001>
module attributes {stable_mosaic.version = 11 : i64} {
  func.func @posterior_encoder_kernel(%arg0: i32, %arg1: memref<2xi32, #tpu.memory_space<smem>>, %arg2: memref<1x24x128xbf16, #tpu.memory_space<vmem>>, %arg3: memref<1x24x128xf32, #tpu.memory_space<vmem>>, %arg4: memref<1x4x1x256xf32, #tpu.memory_space<vmem>>, %arg5: memref<128x128xbf16, #tpu.memory_space<vmem>>, %arg6: memref<1x128xf32, #tpu.memory_space<vmem>>, %arg7: memref<4x640x256xbf16, #tpu.memory_space<vmem>>, %arg8: memref<4x128x256xbf16, #tpu.memory_space<vmem>>, %arg9: memref<4x1x256xf32, #tpu.memory_space<vmem>>, %arg10: memref<128x256xbf16, #tpu.memory_space<vmem>>, %arg11: memref<1x256xf32, #tpu.memory_space<vmem>>, %arg12: memref<1x384x24xf32, #tpu.memory_space<vmem>>, %arg13: memref<28x128xf32, #tpu.memory_space<vmem>>, %arg14: memref<24x128xf32, #tpu.memory_space<vmem>>) attributes {dimension_semantics = [#tpu.dimension_semantics<parallel>], iteration_bounds = array<i64: 2>, scalar_prefetch = 0 : i64, scratch_operands = 2 : i64, tpu.core_type = #tpu.core_type<tc>, window_params = [{transform_indices = @transform_0, window_bounds = array<i64: 2>}, {transform_indices = @transform_1, window_bounds = array<i64: 1, 24, 128>}, {transform_indices = @transform_2, window_bounds = array<i64: 1, 24, 128>}, {transform_indices = @transform_3, window_bounds = array<i64: 1, 4, 1, 256>}, {pipeline_mode = #tpu.pipeline_mode<synchronous>, transform_indices = @transform_4, window_bounds = array<i64: 128, 128>}, {pipeline_mode = #tpu.pipeline_mode<synchronous>, transform_indices = @transform_5, window_bounds = array<i64: 1, 128>}, {pipeline_mode = #tpu.pipeline_mode<synchronous>, transform_indices = @transform_6, window_bounds = array<i64: 4, 640, 256>}, {pipeline_mode = #tpu.pipeline_mode<synchronous>, transform_indices = @transform_7, window_bounds = array<i64: 4, 128, 256>}, {pipeline_mode = #tpu.pipeline_mode<synchronous>, transform_indices = @transform_8, window_bounds = array<i64: 4, 1, 256>}, {pipeline_mode = #tpu.pipeline_mode<synchronous>, transform_indices = @transform_9, window_bounds = array<i64: 128, 256>}, {pipeline_mode = #tpu.pipeline_mode<synchronous>, transform_indices = @transform_10, window_bounds = array<i64: 1, 256>}, {transform_indices = @transform_11, window_bounds = array<i64: 1, 384, 24>}]} {
    %0 = arith.index_cast %arg0 : i32 to index
    %1 = memref.load %arg1[%0] : memref<2xi32, #tpu.memory_space<smem>>
    %2 = tpu.iota {dimensions = array<i32: 0>} : vector<24x1xi32>
    %3 = vector.broadcast %1 : i32 to vector<24x1xi32>
    %4 = arith.cmpi slt, %2, %3 : vector<24x1xi32>
    %5 = arith.extui %4 : vector<24x1xi1> to vector<24x1xi32>
    %6 = arith.sitofp %5 : vector<24x1xi32> to vector<24x1xf32>
    %c0 = arith.constant 0 : index
    %c0_0 = arith.constant 0 : index
    %c0_1 = arith.constant 0 : index
    %7 = vector.load %arg2[%c0, %c0_0, %c0_1] : memref<1x24x128xbf16, #tpu.memory_space<vmem>>, vector<1x24x128xbf16>
    %8 = vector.shape_cast %7 : vector<1x24x128xbf16> to vector<24x128xbf16>
    %c0_2 = arith.constant 0 : index
    %c0_3 = arith.constant 0 : index
    %9 = vector.load %arg5[%c0_2, %c0_3] : memref<128x128xbf16, #tpu.memory_space<vmem>>, vector<128x128xbf16>
    %cst = arith.constant dense<0.000000e+00> : vector<24x128xf32>
    %10 = tpu.matmul %8, %9, %cst {dimension_numbers = #tpu.dot_dimension_numbers<[1], [0], [0], [1], [0, 0, 1, 1], [], []>} : vector<24x128xbf16>, vector<128x128xbf16>, vector<24x128xf32> -> vector<24x128xf32>
    %c0_4 = arith.constant 0 : index
    %c0_5 = arith.constant 0 : index
    %11 = vector.load %arg6[%c0_4, %c0_5] : memref<1x128xf32, #tpu.memory_space<vmem>>, vector<1x128xf32>
    %12 = vector.broadcast %11 : vector<1x128xf32> to vector<24x128xf32>
    %13 = arith.addf %10, %12 : vector<24x128xf32>
    %14 = vector.broadcast %6 : vector<24x1xf32> to vector<24x128xf32>
    %15 = arith.mulf %13, %14 : vector<24x128xf32>
    %cst_6 = arith.constant 0.000000e+00 : f32
    %16 = vector.broadcast %cst_6 : f32 to vector<2x128xf32>
    %c0_7 = arith.constant 0 : index
    %c0_8 = arith.constant 0 : index
    %17 = vector.load %arg13[%c0_7, %c0_8] : memref<28x128xf32, #tpu.memory_space<vmem>>, vector<2x128xf32>
    tpu.vector_store %arg13[%c0_7, %c0_8], %16 {strides = array<i32>} : memref<28x128xf32, #tpu.memory_space<vmem>>, vector<2x128xf32>,
    %c2 = arith.constant 2 : index
    %c0_9 = arith.constant 0 : index
    %18 = vector.load %arg13[%c2, %c0_9] : memref<28x128xf32, #tpu.memory_space<vmem>>, vector<24x128xf32>
    tpu.vector_store %arg13[%c2, %c0_9], %15 {strides = array<i32>} : memref<28x128xf32, #tpu.memory_space<vmem>>, vector<24x128xf32>,
    %cst_10 = arith.constant 0.000000e+00 : f32
    %19 = vector.broadcast %cst_10 : f32 to vector<2x128xf32>
    %c26 = arith.constant 26 : index
    %c0_11 = arith.constant 0 : index
    %20 = vector.load %arg13[%c26, %c0_11] : memref<28x128xf32, #tpu.memory_space<vmem>>, vector<2x128xf32>
    tpu.vector_store %arg13[%c26, %c0_11], %19 {strides = array<i32>} : memref<28x128xf32, #tpu.memory_space<vmem>>, vector<2x128xf32>,
    %cst_12 = arith.constant 0.000000e+00 : f32
    %21 = vector.broadcast %cst_12 : f32 to vector<24x128xf32>
    %c0_13 = arith.constant 0 : index
    %c0_14 = arith.constant 0 : index
    %22 = vector.load %arg14[%c0_13, %c0_14] : memref<24x128xf32, #tpu.memory_space<vmem>>, vector<24x128xf32>
    tpu.vector_store %arg14[%c0_13, %c0_14], %21 {strides = array<i32>} : memref<24x128xf32, #tpu.memory_space<vmem>>, vector<24x128xf32>,
    %c0_i32 = arith.constant 0 : i32
    %c4_i32 = arith.constant 4 : i32
    %23 = arith.addi %c0_i32, %c4_i32 : i32
    %c1_i32 = arith.constant 1 : i32
    scf.for %arg15 = %c0_i32 to %23 step %c1_i32  : i32 {
      %c0_29 = arith.constant 0 : index
      %c0_30 = arith.constant 0 : index
      %49 = vector.load %arg13[%c0_29, %c0_30] : memref<28x128xf32, #tpu.memory_space<vmem>>, vector<24x128xf32>
      %c1 = arith.constant 1 : index
      %c0_31 = arith.constant 0 : index
      %50 = vector.load %arg13[%c1, %c0_31] : memref<28x128xf32, #tpu.memory_space<vmem>>, vector<24x128xf32>
      %c2_32 = arith.constant 2 : index
      %c0_33 = arith.constant 0 : index
      %51 = vector.load %arg13[%c2_32, %c0_33] : memref<28x128xf32, #tpu.memory_space<vmem>>, vector<24x128xf32>
      %c3 = arith.constant 3 : index
      %c0_34 = arith.constant 0 : index
      %52 = vector.load %arg13[%c3, %c0_34] : memref<28x128xf32, #tpu.memory_space<vmem>>, vector<24x128xf32>
      %c4 = arith.constant 4 : index
      %c0_35 = arith.constant 0 : index
      %53 = vector.load %arg13[%c4, %c0_35] : memref<28x128xf32, #tpu.memory_space<vmem>>, vector<24x128xf32>
      %54 = tpu.concatenate %49, %50, %51, %52, %53 in 1 : vector<24x128xf32>, vector<24x128xf32>, vector<24x128xf32>, vector<24x128xf32>, vector<24x128xf32> -> vector<24x640xf32>
      %55 = arith.truncf %54 : vector<24x640xf32> to vector<24x640xbf16>
      %56 = arith.index_cast %arg15 : i32 to index
      %c0_36 = arith.constant 0 : index
      %c0_37 = arith.constant 0 : index
      %57 = vector.load %arg7[%56, %c0_36, %c0_37] : memref<4x640x256xbf16, #tpu.memory_space<vmem>>, vector<1x640x256xbf16>
      %58 = vector.shape_cast %57 : vector<1x640x256xbf16> to vector<640x256xbf16>
      %cst_38 = arith.constant dense<0.000000e+00> : vector<24x256xf32>
      %59 = tpu.matmul %55, %58, %cst_38 {dimension_numbers = #tpu.dot_dimension_numbers<[1], [0], [0], [1], [0, 0, 1, 1], [], []>} : vector<24x640xbf16>, vector<640x256xbf16>, vector<24x256xf32> -> vector<24x256xf32>
      %c0_39 = arith.constant 0 : index
      %60 = arith.index_cast %arg15 : i32 to index
      %c0_40 = arith.constant 0 : index
      %c0_41 = arith.constant 0 : index
      %61 = vector.load %arg4[%c0_39, %60, %c0_40, %c0_41] : memref<1x4x1x256xf32, #tpu.memory_space<vmem>>, vector<1x1x1x256xf32>
      %62 = vector.shape_cast %61 : vector<1x1x1x256xf32> to vector<1x256xf32>
      %63 = vector.broadcast %62 : vector<1x256xf32> to vector<24x256xf32>
      %64 = arith.addf %59, %63 : vector<24x256xf32>
      %65 = vector.extract_strided_slice %64 {offsets = [0, 0], sizes = [24, 128], strides = [1, 1]} : vector<24x256xf32> to vector<24x128xf32>
      %66 = math.tanh %65 : vector<24x128xf32>
      %67 = vector.extract_strided_slice %64 {offsets = [0, 128], sizes = [24, 128], strides = [1, 1]} : vector<24x256xf32> to vector<24x128xf32>
      %68 = arith.negf %67 : vector<24x128xf32>
      %69 = math.exp %68 : vector<24x128xf32>
      %cst_42 = arith.constant 1.000000e+00 : f32
      %70 = vector.broadcast %cst_42 : f32 to vector<24x128xf32>
      %71 = arith.addf %70, %69 : vector<24x128xf32>
      %72 = arith.divf %70, %71 : vector<24x128xf32>
      %73 = arith.mulf %66, %72 : vector<24x128xf32>
      %74 = arith.truncf %73 : vector<24x128xf32> to vector<24x128xbf16>
      %75 = arith.index_cast %arg15 : i32 to index
      %c0_43 = arith.constant 0 : index
      %c0_44 = arith.constant 0 : index
      %76 = vector.load %arg8[%75, %c0_43, %c0_44] : memref<4x128x256xbf16, #tpu.memory_space<vmem>>, vector<1x128x256xbf16>
      %77 = vector.shape_cast %76 : vector<1x128x256xbf16> to vector<128x256xbf16>
      %cst_45 = arith.constant dense<0.000000e+00> : vector<24x256xf32>
      %78 = tpu.matmul %74, %77, %cst_45 {dimension_numbers = #tpu.dot_dimension_numbers<[1], [0], [0], [1], [0, 0, 1, 1], [], []>} : vector<24x128xbf16>, vector<128x256xbf16>, vector<24x256xf32> -> vector<24x256xf32>
      %79 = arith.index_cast %arg15 : i32 to index
      %c0_46 = arith.constant 0 : index
      %c0_47 = arith.constant 0 : index
      %80 = vector.load %arg9[%79, %c0_46, %c0_47] : memref<4x1x256xf32, #tpu.memory_space<vmem>>, vector<1x1x256xf32>
      %81 = vector.shape_cast %80 : vector<1x1x256xf32> to vector<1x256xf32>
      %82 = vector.broadcast %81 : vector<1x256xf32> to vector<24x256xf32>
      %83 = arith.addf %78, %82 : vector<24x256xf32>
      %84 = vector.extract_strided_slice %83 {offsets = [0, 0], sizes = [24, 128], strides = [1, 1]} : vector<24x256xf32> to vector<24x128xf32>
      %85 = arith.addf %51, %84 : vector<24x128xf32>
      %86 = vector.broadcast %6 : vector<24x1xf32> to vector<24x128xf32>
      %87 = arith.mulf %85, %86 : vector<24x128xf32>
      %c2_48 = arith.constant 2 : index
      %c0_49 = arith.constant 0 : index
      %88 = vector.load %arg13[%c2_48, %c0_49] : memref<28x128xf32, #tpu.memory_space<vmem>>, vector<24x128xf32>
      tpu.vector_store %arg13[%c2_48, %c0_49], %87 {strides = array<i32>} : memref<28x128xf32, #tpu.memory_space<vmem>>, vector<24x128xf32>,
      %c0_50 = arith.constant 0 : index
      %c0_51 = arith.constant 0 : index
      %89 = vector.load %arg14[%c0_50, %c0_51] : memref<24x128xf32, #tpu.memory_space<vmem>>, vector<24x128xf32>
      %90 = vector.extract_strided_slice %83 {offsets = [0, 128], sizes = [24, 128], strides = [1, 1]} : vector<24x256xf32> to vector<24x128xf32>
      %91 = arith.addf %89, %90 : vector<24x128xf32>
      %c0_52 = arith.constant 0 : index
      %c0_53 = arith.constant 0 : index
      %92 = vector.load %arg14[%c0_52, %c0_53] : memref<24x128xf32, #tpu.memory_space<vmem>>, vector<24x128xf32>
      tpu.vector_store %arg14[%c0_52, %c0_53], %91 {strides = array<i32>} : memref<24x128xf32, #tpu.memory_space<vmem>>, vector<24x128xf32>,
    }
    %c4_i32_15 = arith.constant 4 : i32
    %c0_16 = arith.constant 0 : index
    %c0_17 = arith.constant 0 : index
    %24 = vector.load %arg14[%c0_16, %c0_17] : memref<24x128xf32, #tpu.memory_space<vmem>>, vector<24x128xf32>
    %25 = vector.broadcast %6 : vector<24x1xf32> to vector<24x128xf32>
    %26 = arith.mulf %24, %25 : vector<24x128xf32>
    %27 = arith.truncf %26 : vector<24x128xf32> to vector<24x128xbf16>
    %c0_18 = arith.constant 0 : index
    %c0_19 = arith.constant 0 : index
    %28 = vector.load %arg10[%c0_18, %c0_19] : memref<128x256xbf16, #tpu.memory_space<vmem>>, vector<128x256xbf16>
    %cst_20 = arith.constant dense<0.000000e+00> : vector<24x256xf32>
    %29 = tpu.matmul %27, %28, %cst_20 {dimension_numbers = #tpu.dot_dimension_numbers<[1], [0], [0], [1], [0, 0, 1, 1], [], []>} : vector<24x128xbf16>, vector<128x256xbf16>, vector<24x256xf32> -> vector<24x256xf32>
    %c0_21 = arith.constant 0 : index
    %c0_22 = arith.constant 0 : index
    %30 = vector.load %arg11[%c0_21, %c0_22] : memref<1x256xf32, #tpu.memory_space<vmem>>, vector<1x256xf32>
    %31 = vector.broadcast %30 : vector<1x256xf32> to vector<24x256xf32>
    %32 = arith.addf %29, %31 : vector<24x256xf32>
    %33 = vector.broadcast %6 : vector<24x1xf32> to vector<24x256xf32>
    %34 = arith.mulf %32, %33 : vector<24x256xf32>
    %35 = vector.extract_strided_slice %34 {offsets = [0, 0], sizes = [24, 128], strides = [1, 1]} : vector<24x256xf32> to vector<24x128xf32>
    %36 = vector.extract_strided_slice %34 {offsets = [0, 128], sizes = [24, 128], strides = [1, 1]} : vector<24x256xf32> to vector<24x128xf32>
    %c0_23 = arith.constant 0 : index
    %c0_24 = arith.constant 0 : index
    %c0_25 = arith.constant 0 : index
    %37 = vector.load %arg3[%c0_23, %c0_24, %c0_25] : memref<1x24x128xf32, #tpu.memory_space<vmem>>, vector<1x24x128xf32>
    %38 = vector.shape_cast %37 : vector<1x24x128xf32> to vector<24x128xf32>
    %39 = math.exp %36 : vector<24x128xf32>
    %40 = arith.mulf %38, %39 : vector<24x128xf32>
    %41 = vector.broadcast %6 : vector<24x1xf32> to vector<24x128xf32>
    %42 = arith.mulf %40, %41 : vector<24x128xf32>
    %43 = arith.addf %35, %42 : vector<24x128xf32>
    %44 = tpu.concatenate %43, %35, %36 in 1 : vector<24x128xf32>, vector<24x128xf32>, vector<24x128xf32> -> vector<24x384xf32>
    %45 = tpu.transpose %44, [1, 0] : vector<24x384xf32> -> vector<384x24xf32>
    %c0_26 = arith.constant 0 : index
    %c0_27 = arith.constant 0 : index
    %c0_28 = arith.constant 0 : index
    %46 = vector.load %arg12[%c0_26, %c0_27, %c0_28] : memref<1x384x24xf32, #tpu.memory_space<vmem>>, vector<1x384x24xf32>
    %47 = vector.shape_cast %46 : vector<1x384x24xf32> to vector<384x24xf32>
    %48 = vector.shape_cast %45 : vector<384x24xf32> to vector<1x384x24xf32>
    tpu.vector_store %arg12[%c0_26, %c0_27, %c0_28], %48 {strides = array<i32>} : memref<1x384x24xf32, #tpu.memory_space<vmem>>, vector<1x384x24xf32>,
    return
  }
  func.func @transform_0(%arg0: i32) -> i32 {
    %c0_i32 = arith.constant 0 : i32
    %c0_i32_0 = arith.constant 0 : i32
    return %c0_i32 : i32
  }
  func.func @transform_1(%arg0: i32) -> (i32, i32, i32) {
    %c0_i32 = arith.constant 0 : i32
    %c0_i32_0 = arith.constant 0 : i32
    %c0_i32_1 = arith.constant 0 : i32
    return %arg0, %c0_i32, %c0_i32_0 : i32, i32, i32
  }
  func.func @transform_2(%arg0: i32) -> (i32, i32, i32) {
    %c0_i32 = arith.constant 0 : i32
    %c0_i32_0 = arith.constant 0 : i32
    %c0_i32_1 = arith.constant 0 : i32
    return %arg0, %c0_i32, %c0_i32_0 : i32, i32, i32
  }
  func.func @transform_3(%arg0: i32) -> (i32, i32, i32, i32) {
    %c0_i32 = arith.constant 0 : i32
    %c0_i32_0 = arith.constant 0 : i32
    %c0_i32_1 = arith.constant 0 : i32
    %c0_i32_2 = arith.constant 0 : i32
    return %arg0, %c0_i32, %c0_i32_0, %c0_i32_1 : i32, i32, i32, i32
  }
  func.func @transform_4(%arg0: i32) -> (i32, i32) {
    %c0_i32 = arith.constant 0 : i32
    %c0_i32_0 = arith.constant 0 : i32
    %c0_i32_1 = arith.constant 0 : i32
    return %c0_i32, %c0_i32_0 : i32, i32
  }
  func.func @transform_5(%arg0: i32) -> (i32, i32) {
    %c0_i32 = arith.constant 0 : i32
    %c0_i32_0 = arith.constant 0 : i32
    %c0_i32_1 = arith.constant 0 : i32
    return %c0_i32, %c0_i32_0 : i32, i32
  }
  func.func @transform_6(%arg0: i32) -> (i32, i32, i32) {
    %c0_i32 = arith.constant 0 : i32
    %c0_i32_0 = arith.constant 0 : i32
    %c0_i32_1 = arith.constant 0 : i32
    %c0_i32_2 = arith.constant 0 : i32
    return %c0_i32, %c0_i32_0, %c0_i32_1 : i32, i32, i32
  }
  func.func @transform_7(%arg0: i32) -> (i32, i32, i32) {
    %c0_i32 = arith.constant 0 : i32
    %c0_i32_0 = arith.constant 0 : i32
    %c0_i32_1 = arith.constant 0 : i32
    %c0_i32_2 = arith.constant 0 : i32
    return %c0_i32, %c0_i32_0, %c0_i32_1 : i32, i32, i32
  }
  func.func @transform_8(%arg0: i32) -> (i32, i32, i32) {
    %c0_i32 = arith.constant 0 : i32
    %c0_i32_0 = arith.constant 0 : i32
    %c0_i32_1 = arith.constant 0 : i32
    %c0_i32_2 = arith.constant 0 : i32
    return %c0_i32, %c0_i32_0, %c0_i32_1 : i32, i32, i32
  }
  func.func @transform_9(%arg0: i32) -> (i32, i32) {
    %c0_i32 = arith.constant 0 : i32
    %c0_i32_0 = arith.constant 0 : i32
    %c0_i32_1 = arith.constant 0 : i32
    return %c0_i32, %c0_i32_0 : i32, i32
  }
  func.func @transform_10(%arg0: i32) -> (i32, i32) {
    %c0_i32 = arith.constant 0 : i32
    %c0_i32_0 = arith.constant 0 : i32
    %c0_i32_1 = arith.constant 0 : i32
    return %c0_i32, %c0_i32_0 : i32, i32
  }
  func.func @transform_11(%arg0: i32) -> (i32, i32, i32) {
    %c0_i32 = arith.constant 0 : i32
    %c0_i32_0 = arith.constant 0 : i32
    %c0_i32_1 = arith.constant 0 : i32
    return %arg0, %c0_i32, %c0_i32_0 : i32, i32, i32
  }
}

</mosaic_0001>

<bundles_post_ra>
// kernel: posterior_encoder_forward.1
= control target key start
LH: loop header
LB: loop body
LE: loop exit
PB: predicated region body
PF: predicated region fallthrough
CT: control target
= control target key end

     0   :  { %16 = vsyncpa [#allocation5], 0  ;;  %s2716_s17 = smov 0   ;;  %s3305_s0 = inlined_call_operand.vmem [shape: s32[2], index: 0, kind: input, shape index: {}]   ;;  %s3306_s1 = inlined_call_operand.vmem [shape: bf16[2,24,128], index: 1, kind: input, shape index: {}]   ;;  %s3307_s2 = inlined_call_operand.vmem [shape: f32[2,24,128], index: 2, kind: input, shape index: {}]   ;;  %s3308_s3 = inlined_call_operand.vmem [shape: f32[2,4,1,256], index: 3, kind: input, shape index: {}]   ;;  %s3309_s4 = inlined_call_operand.vmem [shape: bf16[128,128], index: 4, kind: input, shape index: {}]   ;;  %s3310_s5 = inlined_call_operand.vmem [shape: f32[1,128], index: 5, kind: input, shape index: {}]   ;;  %s3311_s6 = inlined_call_operand.vmem [shape: bf16[4,640,256], index: 6, kind: input, shape index: {}]   ;;  %s3312_s7 = inlined_call_operand.vmem [shape: bf16[4,128,256], index: 7, kind: input, shape index: {}]   ;;  %s3313_s8 = inlined_call_operand.vmem [shape: f32[4,1,256], index: 8, kind: input, shape index: {}]   ;;  %s3314_s9 = inlined_call_operand.vmem [shape: bf16[128,256], index: 9, kind: input, shape index: {}]   ;;  %s3315_s10 = inlined_call_operand.vmem [shape: f32[1,256], index: 10, kind: input, shape index: {}]   ;;  %s3316_s11 = inlined_call_operand.vmem [shape: f32[2,384,24], index: 11, kind: output, shape index: {}]  }
   0x1 LB: > { %s2722_s18 = sadd.s32 4294967295, %s2648_s17   ;;  %p1911_p0 = scmp.ge.s32.totalorder %s2648_s17, 1  ;;  %s2648_s17 = sphi %s2716_s17, %s22_s17  }
   0x2   : > { %p299_p1 = scmp.lt.s32.totalorder %s2648_s17, 3  ;;  %s311_s21 = sshll.u32 %s3305_s0, 4  ;;  %s312_s21 = int_to_ptr.vmem [resolvable:$true] %s311_s21 }
   0x3   : > { %p2574_p3 = scmp.eq.s32.totalorder %s2722_s18, 0  ;;  %s2654_s22 = smov [#allocation4]  }
   0x4   : > { %p300_p2 = pnand %p1911_p0, %p299_p1 }
   0x6   : > { %p2570_p4 = pneg %p300_p2  ;;  %368 = sbr.rel (%p300_p2) target bundleno = 1071 (0x42f), region = 64 }
   0x8   : > { %p2571_p5 = pnand %p2574_p3, %p2570_p4 }
   0xa   : > { %2573 = dma.vmem_to_smem (!%p2571_p5), %s312_s21, 16, %s2654_s22, [#allocation5]  }
   0xb   : > { %2643 = dma.done.wait (%p2574_p3), [#allocation5], 16  }
   0xc   : > { %2645 = vsyncadd (%p2574_p3), [#allocation5], 4294967280 }
   0xd   : > { %375 = sfence }
   0xe   : > { %v2424_v0 = vld [vmem:[%s3309_s4 + $0x38] sm:$0xff]  ;;  %p419_p6 = scmp.lt.s32.totalorder %s2722_s18, 1  ;;  %v2423_v1 = vld [vmem:[%s3309_s4 + $0x30] sm:$0xff]  ;;  %v2655_v2 = vmov 0.0   ;;  %v2422_v3 = vld [vmem:[%s3309_s4 + $0x28] sm:$0xff]  ;;  %s438_s25 = sld [smem:[#allocation4 + %s2722_s18]]  ;;  %v439_v13 = vlaneseq }
   0xf   : > { %534 = vmatpush.bf16.msra.mxu0 %v2424_v0  ;;  %2539 = vmatpush.bf16.msra.mxu1 %v2424_v0  ;;  %560 = vst [vmem:[#allocation3 + $0x10] sm:$0xff] %v2655_v2  ;;  %v2421_v4 = vld [vmem:[%s3309_s4 + $0x20] sm:$0xff]  ;;  %v2420_v5 = vld [vmem:[%s3309_s4 + $0x18] sm:$0xff]  ;;  %v2419_v6 = vld [vmem:[%s3309_s4 + $0x10] sm:$0xff] }
  0x10   : > { %s420_s27 = scalar_select %p419_p6, %s2722_s18, 1  ;;  %555 = vst [vmem:[#allocation2] sm:$0x3] %v2655_v2  ;;  %v2418_v7 = vld [vmem:[%s3309_s4 + $0x8] sm:$0xff]  ;;  %v2417_v10 = vld [vmem:[%s3309_s4] sm:$0xff]  ;;  %v440_v14 = vshrl.u32 %v439_v13, 7 }
  0x11   : > { %559 = vst [vmem:[#allocation2 + $0x1a] sm:$0x3] %v2655_v2  ;;  %v2594_v17 = vld [vmem:[%s3310_s5] ss:$0 sm:$0xff]  ;;  %s2787_s18 = smov 0  }
  0x12   : > { %s1918_s28 = sshll.u32 %s420_s27, 3  ;;  %s2564_s29 = smul.u32 24, %s420_s27  ;;  %561 = vst [vmem:[#allocation3] sm:$0xff] %v2655_v2  ;;  %v442_v15 = vadd.s32 16, %v440_v14  ;;  %v441_v24 = vadd.s32 8, %v440_v14 }
  0x13   : > { %s2741_s13 = scalar_lea.vmem %s3308_s3, %s1918_s28  ;;  %535 = vmatpush.bf16.msra.mxu0 %v2423_v1  ;;  %2540 = vmatpush.bf16.msra.mxu1 %v2423_v1  ;;  %s2565_s16 = smul.u32 384, %s420_s27  ;;  %562 = vst [vmem:[#allocation3 + $0x8] sm:$0xff] %v2655_v2 }
  0x14   : > { %s2749_s21 = scalar_lea.vmem %s3307_s2, %s2564_s29  ;;  %s2563_s12 = smul.u32 12, %s420_s27  ;;  %v443_v16 = vstv %s438_s25 }
  0x15   : > { %s2754_s24 = scalar_lea.vmem %s3316_s11, %s2565_s16  ;;  %vm444_vm0 = vcmp.lt.s32.totalorder %v440_v14, %v443_v16  ;;  %vm446_vm1 = vcmp.lt.s32.totalorder %v442_v15, %v443_v16  ;;  %vm445_vm2 = vcmp.lt.s32.totalorder %v441_v24, %v443_v16 }
  0x16   : > { %s423_s19 = scalar_lea.vmem %s3306_s1, %s2563_s12  ;;  %v2778_v18 = vsel %vm444_vm0, 1.0, %v2655_v2  ;;  %v2780_v20 = vsel %vm446_vm1, 1.0, %v2655_v2  ;;  %v2784_v27 = vsel %vm445_vm2, 1.0, %v2655_v2 }
  0x17   : > { %536 = vmatpush.bf16.msra.mxu0 %v2422_v3  ;;  %2541 = vmatpush.bf16.msra.mxu1 %v2422_v3  ;;  %v455_v8 = vld [vmem:[%s423_s19 + $0x8] sm:$0xf]  ;;  %v2416_v11 = vld [vmem:[%s423_s19] sm:$0xff] }
  0x18   : > { %v481_v9 = vunpack.c.l.b16 %v455_v8 }
  0x1a   : > { %v483_v12 = vpack.c.b16 %v481_v9, %v481_v9 }
  0x1b   : > { %537 = vmatpush.bf16.msra.mxu0 %v2421_v4  ;;  %2542 = vmatpush.bf16.msra.mxu1 %v2421_v4 }
  0x1f   : > { %538 = vmatpush.bf16.msra.mxu0 %v2420_v5  ;;  %2543 = vmatpush.bf16.msra.mxu1 %v2420_v5 }
  0x23   : > { %539 = vmatpush.bf16.msra.mxu0 %v2419_v6  ;;  %2544 = vmatpush.bf16.msra.mxu1 %v2419_v6 }
  0x27   : > { %540 = vmatpush.bf16.msra.mxu0 %v2418_v7  ;;  %2545 = vmatpush.bf16.msra.mxu1 %v2418_v7 }
  0x2b   : > { %541 = vmatpush.bf16.msra.mxu0 %v2417_v10  ;;  %2546 = vmatpush.bf16.msra.mxu1 %v2417_v10 }
  0x2e   : > { %542 = vmatmul.bf16.vlgmr.msra.gmra.mxu0 %v2416_v11  ;;  %547 = vmatmul.bf16.vlgmr.msra.gmra.mxu1 %v483_v12 }
  0xab   : > { %v543_v19 = vpop.f32.mrf.mxu0  ;;  %v548_v21 = vpop.f32.mrf.mxu1 }
  0xac   : > { %v544_v22 = vadd.f32 %v2594_v17, %v543_v19  ;;  %v549_v23 = vadd.f32 %v2594_v17, %v548_v21 }
  0xae   : > { %v552_v25 = vmul.f32 %v2778_v18, %v544_v22  ;;  %v554_v26 = vmul.f32 %v2780_v20, %v549_v23 }
  0xb0   : > { %556 = vst [vmem:[#allocation2 + $0x2] sm:$0xff] %v552_v25 }
  0xb1   : > { %558 = vst [vmem:[#allocation2 + $0x12] sm:$0xff] %v554_v26 }
  0xb3   : > { %v545_v28 = vpop.f32.mrf.mxu0  ;;  %v550_v29 = vpop.f32.mrf.mxu1 }
  0xb4   : > { %v546_v30 = vadd.f32 %v2594_v17, %v545_v28 }
  0xb6   : > { %v553_v31 = vmul.f32 %v2784_v27, %v546_v30 }
  0xb8   : > { %557 = vst [vmem:[#allocation2 + $0xa] sm:$0xff] %v553_v31 }
  0xb9 LB: >> { %s2425_s30 = smul.u32 640, %s2652_s18  ;;  %s1960_s15 = sshll.u32 %s2652_s18, 1  ;;  %s2652_s18 = sphi %s2787_s18, %s568_s18  }
  0xba   : >> { %s678_s16 = scalar_lea.vmem %s2741_s13, %s1960_s15  ;;  %s2506_s19 = sshll.u32 %s2652_s18, 7 }
  0xbb   : >> { %s2796_s14 = scalar_lea.vmem %s3311_s6, %s2425_s30  ;;  %s3022_s27 = scalar_lea.vmem %s3312_s7, %s2506_s19 }
  0xbc   : >> { %v2019_v32 = vld [vmem:[%s2796_s14 + $0x70] sm:$0xf]  ;;  %v2441_v33 = vld [vmem:[%s2796_s14 + $0x74] sm:$0xf0]  ;;  %v2011_v43 = vld [vmem:[%s2796_s14 + $0x60] sm:$0xf]  ;;  %s1349_s26 = scalar_lea.vmem %s3313_s8, %s1960_s15 }
  0xbd   : >> { %v2083_v34 = vld [vmem:[%s2796_s14 + $0xf0] sm:$0xf]  ;;  %v2020_v35 = vor.u32 %v2441_v33, %v2019_v32  ;;  %v2457_v36 = vld [vmem:[%s2796_s14 + $0xf4] sm:$0xf0]  ;;  %v2439_v45 = vld [vmem:[%s2796_s14 + $0x64] sm:$0xf0] }
  0xbe   : >> { %v2147_v37 = vld [vmem:[%s2796_s14 + $0x170] sm:$0xf]  ;;  %v2473_v38 = vld [vmem:[%s2796_s14 + $0x174] sm:$0xf0]  ;;  %v2084_v39 = vor.u32 %v2457_v36, %v2083_v34  ;;  %v2075_v46 = vld [vmem:[%s2796_s14 + $0xe0] sm:$0xf]  ;;  %v2012_v48 = vor.u32 %v2439_v45, %v2011_v43 }
  0xbf   : >> { %v2148_v40 = vor.u32 %v2473_v38, %v2147_v37  ;;  %v2211_v41 = vld [vmem:[%s2796_s14 + $0x1f0] sm:$0xf]  ;;  %v2489_v42 = vld [vmem:[%s2796_s14 + $0x1f4] sm:$0xf0]  ;;  %1085 = vmatpush.bf16.msra.mxu0 %v2020_v35  ;;  %v2455_v47 = vld [vmem:[%s2796_s14 + $0xe4] sm:$0xf0] }
  0xc0   : >> { %v2212_v44 = vor.u32 %v2489_v42, %v2211_v41  ;;  %1103 = vmatpush.bf16.msra.mxu1 %v2084_v39  ;;  %v2076_v49 = vor.u32 %v2455_v47, %v2075_v46  ;;  %v2139_v50 = vld [vmem:[%s2796_s14 + $0x160] sm:$0xf]  ;;  %v2471_v51 = vld [vmem:[%s2796_s14 + $0x164] sm:$0xf0]  ;;  %v2003_v55 = vld [vmem:[%s2796_s14 + $0x50] sm:$0xf] }
  0xc1   : >> { %1121 = vmatpush.bf16.msra.mxu2 %v2148_v40  ;;  %v2203_v52 = vld [vmem:[%s2796_s14 + $0x1e0] sm:$0xf]  ;;  %v2140_v53 = vor.u32 %v2471_v51, %v2139_v50  ;;  %v2487_v54 = vld [vmem:[%s2796_s14 + $0x1e4] sm:$0xf0]  ;;  %v2437_v56 = vld [vmem:[%s2796_s14 + $0x54] sm:$0xf0] }
  0xc2   : >> { %1139 = vmatpush.bf16.msra.mxu3 %v2212_v44  ;;  %v2204_v57 = vor.u32 %v2487_v54, %v2203_v52  ;;  %v2067_v58 = vld [vmem:[%s2796_s14 + $0xd0] sm:$0xf]  ;;  %v2453_v59 = vld [vmem:[%s2796_s14 + $0xd4] sm:$0xf0]  ;;  %v2004_v61 = vor.u32 %v2437_v56, %v2003_v55  ;;  %v1995_v3 = vld [vmem:[%s2796_s14 + $0x40] sm:$0xf] }
  0xc3   : >> { %v2131_v60 = vld [vmem:[%s2796_s14 + $0x150] sm:$0xf]  ;;  %1086 = vmatpush.bf16.msra.mxu0 %v2012_v48  ;;  %v2469_v62 = vld [vmem:[%s2796_s14 + $0x154] sm:$0xf0]  ;;  %v2068_v1 = vor.u32 %v2453_v59, %v2067_v58  ;;  %v2435_v4 = vld [vmem:[%s2796_s14 + $0x44] sm:$0xf0] }
  0xc4   : >> { %v2195_v63 = vld [vmem:[%s2796_s14 + $0x1d0] sm:$0xf]  ;;  %v2485_v0 = vld [vmem:[%s2796_s14 + $0x1d4] sm:$0xf0]  ;;  %1104 = vmatpush.bf16.msra.mxu1 %v2076_v49  ;;  %v2132_v2 = vor.u32 %v2469_v62, %v2131_v60  ;;  %v2059_v5 = vld [vmem:[%s2796_s14 + $0xc0] sm:$0xf]  ;;  %v1996_v12 = vor.u32 %v2435_v4, %v1995_v3 }
  0xc5   : >> { %1122 = vmatpush.bf16.msra.mxu2 %v2140_v53  ;;  %v2196_v6 = vor.u32 %v2485_v0, %v2195_v63  ;;  %v2451_v7 = vld [vmem:[%s2796_s14 + $0xc4] sm:$0xf0]  ;;  %v2123_v8 = vld [vmem:[%s2796_s14 + $0x140] sm:$0xf]  ;;  %v1987_v15 = vld [vmem:[%s2796_s14 + $0x30] sm:$0xf] }
  0xc6   : >> { %1140 = vmatpush.bf16.msra.mxu3 %v2204_v57  ;;  %v2467_v9 = vld [vmem:[%s2796_s14 + $0x144] sm:$0xf0]  ;;  %v2187_v10 = vld [vmem:[%s2796_s14 + $0x1c0] sm:$0xf]  ;;  %v2060_v13 = vor.u32 %v2451_v7, %v2059_v5  ;;  %v2433_v16 = vld [vmem:[%s2796_s14 + $0x34] sm:$0xf0] }
  0xc7   : >> { %v2483_v11 = vld [vmem:[%s2796_s14 + $0x1c4] sm:$0xf0]  ;;  %1087 = vmatpush.bf16.msra.mxu0 %v2004_v61  ;;  %v2124_v14 = vor.u32 %v2467_v9, %v2123_v8  ;;  %v2051_v17 = vld [vmem:[%s2796_s14 + $0xb0] sm:$0xf]  ;;  %v2449_v21 = vld [vmem:[%s2796_s14 + $0xb4] sm:$0xf0]  ;;  %v1988_v26 = vor.u32 %v2433_v16, %v1987_v15 }
  0xc8   : >> { %1105 = vmatpush.bf16.msra.mxu1 %v2068_v1  ;;  %v2188_v19 = vor.u32 %v2483_v11, %v2187_v10  ;;  %v2115_v22 = vld [vmem:[%s2796_s14 + $0x130] sm:$0xf]  ;;  %v2465_v23 = vld [vmem:[%s2796_s14 + $0x134] sm:$0xf0]  ;;  %v2052_v28 = vor.u32 %v2449_v21, %v2051_v17  ;;  %v1979_v30 = vld [vmem:[%s2796_s14 + $0x20] sm:$0xf] }
  0xc9   : >> { %1123 = vmatpush.bf16.msra.mxu2 %v2132_v2  ;;  %v2179_v24 = vld [vmem:[%s2796_s14 + $0x1b0] sm:$0xf]  ;;  %v2481_v25 = vld [vmem:[%s2796_s14 + $0x1b4] sm:$0xf0]  ;;  %v2116_v29 = vor.u32 %v2465_v23, %v2115_v22  ;;  %v2431_v31 = vld [vmem:[%s2796_s14 + $0x24] sm:$0xf0] }
  0xca   : >> { %1141 = vmatpush.bf16.msra.mxu3 %v2196_v6  ;;  %v2043_v32 = vld [vmem:[%s2796_s14 + $0xa0] sm:$0xf]  ;;  %v2180_v33 = vor.u32 %v2481_v25, %v2179_v24  ;;  %v2447_v34 = vld [vmem:[%s2796_s14 + $0xa4] sm:$0xf0]  ;;  %v1980_v39 = vor.u32 %v2431_v31, %v1979_v30  ;;  %v1971_v42 = vld [vmem:[%s2796_s14 + $0x10] sm:$0xf] }
  0xcb   : >> { %1088 = vmatpush.bf16.msra.mxu0 %v1996_v12  ;;  %v2107_v35 = vld [vmem:[%s2796_s14 + $0x120] sm:$0xf]  ;;  %v2463_v36 = vld [vmem:[%s2796_s14 + $0x124] sm:$0xf0]  ;;  %v2044_v40 = vor.u32 %v2447_v34, %v2043_v32  ;;  %v2429_v43 = vld [vmem:[%s2796_s14 + $0x14] sm:$0xf0] }
  0xcc   : >> { %1106 = vmatpush.bf16.msra.mxu1 %v2060_v13  ;;  %v2171_v37 = vld [vmem:[%s2796_s14 + $0x1a0] sm:$0xf]  ;;  %v2479_v38 = vld [vmem:[%s2796_s14 + $0x1a4] sm:$0xf0]  ;;  %v2108_v41 = vor.u32 %v2463_v36, %v2107_v35  ;;  %v2035_v44 = vld [vmem:[%s2796_s14 + $0x90] sm:$0xf]  ;;  %v1972_v52 = vor.u32 %v2429_v43, %v1971_v42 }
  0xcd   : >> { %1124 = vmatpush.bf16.msra.mxu2 %v2124_v14  ;;  %v2172_v45 = vor.u32 %v2479_v38, %v2171_v37  ;;  %v2445_v46 = vld [vmem:[%s2796_s14 + $0x94] sm:$0xf0]  ;;  %v2099_v47 = vld [vmem:[%s2796_s14 + $0x110] sm:$0xf]  ;;  %v1963_v51 = vld [vmem:[%s2796_s14] sm:$0xf] }
  0xce   : >> { %1142 = vmatpush.bf16.msra.mxu3 %v2188_v19  ;;  %v2461_v48 = vld [vmem:[%s2796_s14 + $0x114] sm:$0xf0]  ;;  %v2163_v49 = vld [vmem:[%s2796_s14 + $0x190] sm:$0xf]  ;;  %v2427_v53 = vld [vmem:[%s2796_s14 + $0x4] sm:$0xf0]  ;;  %v2036_v56 = vor.u32 %v2445_v46, %v2035_v44 }
  0xcf   : >> { %1089 = vmatpush.bf16.msra.mxu0 %v1988_v26  ;;  %v2477_v50 = vld [vmem:[%s2796_s14 + $0x194] sm:$0xf0]  ;;  %v2027_v54 = vld [vmem:[%s2796_s14 + $0x80] sm:$0xf]  ;;  %v2443_v55 = vld [vmem:[%s2796_s14 + $0x84] sm:$0xf0]  ;;  %v2100_v57 = vor.u32 %v2461_v48, %v2099_v47  ;;  %v1964_v5 = vor.u32 %v2427_v53, %v1963_v51 }
  0xd0   : >> { %1107 = vmatpush.bf16.msra.mxu1 %v2052_v28  ;;  %v2091_v58 = vld [vmem:[%s2796_s14 + $0x100] sm:$0xf]  ;;  %v2459_v59 = vld [vmem:[%s2796_s14 + $0x104] sm:$0xf0]  ;;  %v2164_v61 = vor.u32 %v2477_v50, %v2163_v49  ;;  %v2275_v3 = vld [vmem:[%s2796_s14 + $0x270] sm:$0xf]  ;;  %v2028_v9 = vor.u32 %v2443_v55, %v2027_v54 }
  0xd1   : >> { %1125 = vmatpush.bf16.msra.mxu2 %v2116_v29  ;;  %v2155_v60 = vld [vmem:[%s2796_s14 + $0x180] sm:$0xf]  ;;  %v2475_v62 = vld [vmem:[%s2796_s14 + $0x184] sm:$0xf0]  ;;  %v2505_v4 = vld [vmem:[%s2796_s14 + $0x274] sm:$0xf0]  ;;  %v2092_v10 = vor.u32 %v2459_v59, %v2091_v58 }
  0xd2   : >> { %1143 = vmatpush.bf16.msra.mxu3 %v2180_v33  ;;  %v569_v63 = vld [vmem:[#allocation2] sm:$0xff]  ;;  %v570_v0 = vld [vmem:[#allocation2 + $0x8] sm:$0xff]  ;;  %v2440_v7 = vld [vmem:[%s2796_s14 + $0x74] sm:$0xf]  ;;  %v2156_v14 = vor.u32 %v2475_v62, %v2155_v60  ;;  %v2276_v15 = vor.u32 %v2505_v4, %v2275_v3  ;;  %s568_s18 = sadd.s32 1, %s2652_s18  }
  0xd3   : >> { %1090 = vmatpush.bf16.msra.mxu0 %v1980_v39  ;;  %v572_v1 = vld [vmem:[#allocation2 + $0x1] sm:$0xff]  ;;  %v573_v2 = vld [vmem:[#allocation2 + $0x9] sm:$0xff]  ;;  %v2021_v8 = vld [vmem:[%s2796_s14 + $0x78] sm:$0xf0]  ;;  %v2873_v21 = vpack.c.bf16 %v570_v0, %v569_v63  ;;  %p565_p7 = scmp.ge.s32.totalorder %s568_s18, 4  }
  0xd4   : >> { %1108 = vmatpush.bf16.msra.mxu1 %v2044_v40  ;;  %v2864_v6 = vld [vmem:[#allocation2 + $0x2] sm:$0xff]  ;;  %v2868_v11 = vld [vmem:[#allocation2 + $0xa] sm:$0xff]  ;;  %v2456_v12 = vld [vmem:[%s2796_s14 + $0xf4] sm:$0xf]  ;;  %v2024_v22 = vor.u32 %v2440_v7, %v2021_v8  ;;  %v2878_v26 = vpack.c.bf16 %v573_v2, %v572_v1  ;;  %vm1756_vm15 = vcmask (%p565_p7), 195584  }
  0xd5   : >> { %1126 = vmatpush.bf16.msra.mxu2 %v2108_v41  ;;  %v2085_v13 = vld [vmem:[%s2796_s14 + $0xf8] sm:$0xf0]  ;;  %v578_v16 = vld [vmem:[#allocation2 + $0x3] sm:$0xff]  ;;  %v579_v17 = vld [vmem:[#allocation2 + $0xb] sm:$0xff]  ;;  %v2882_v28 = vpack.c.bf16 %v2868_v11, %v2864_v6 }
  0xd6   : >> { %1144 = vmatpush.bf16.msra.mxu3 %v2172_v45  ;;  %v2472_v19 = vld [vmem:[%s2796_s14 + $0x174] sm:$0xf]  ;;  %v2149_v23 = vld [vmem:[%s2796_s14 + $0x178] sm:$0xf0]  ;;  %v2267_v24 = vld [vmem:[%s2796_s14 + $0x260] sm:$0xf]  ;;  %v2088_v31 = vor.u32 %v2456_v12, %v2085_v13  ;;  %v2886_v32 = vpack.c.bf16 %v579_v17, %v578_v16 }
  0xd7   : >> { %1091 = vmatpush.bf16.msra.mxu0 %v1972_v52  ;;  %v2503_v25 = vld [vmem:[%s2796_s14 + $0x264] sm:$0xf0]  ;;  %v2438_v29 = vld [vmem:[%s2796_s14 + $0x64] sm:$0xf]  ;;  %v2013_v30 = vld [vmem:[%s2796_s14 + $0x68] sm:$0xf0]  ;;  %v2152_v33 = vor.u32 %v2472_v19, %v2149_v23 }
  0xd8   : >> { %1109 = vmatpush.bf16.msra.mxu1 %v2036_v56  ;;  %v2268_v34 = vor.u32 %v2503_v25, %v2267_v24  ;;  %v2454_v35 = vld [vmem:[%s2796_s14 + $0xe4] sm:$0xf]  ;;  %v2077_v36 = vld [vmem:[%s2796_s14 + $0xe8] sm:$0xf0]  ;;  %v2016_v38 = vor.u32 %v2438_v29, %v2013_v30  ;;  %v2259_v40 = vld [vmem:[%s2796_s14 + $0x250] sm:$0xf] }
  0xd9   : >> { %1127 = vmatpush.bf16.msra.mxu2 %v2100_v57  ;;  %v2470_v37 = vld [vmem:[%s2796_s14 + $0x164] sm:$0xf]  ;;  %v2141_v39 = vld [vmem:[%s2796_s14 + $0x168] sm:$0xf0]  ;;  %v2501_v41 = vld [vmem:[%s2796_s14 + $0x254] sm:$0xf0]  ;;  %v2080_v44 = vor.u32 %v2454_v35, %v2077_v36 }
  0xda   : >> { %1145 = vmatpush.bf16.msra.mxu3 %v2164_v61  ;;  %v2436_v42 = vld [vmem:[%s2796_s14 + $0x54] sm:$0xf]  ;;  %v2005_v43 = vld [vmem:[%s2796_s14 + $0x58] sm:$0xf0]  ;;  %v2144_v45 = vor.u32 %v2470_v37, %v2141_v39  ;;  %v2260_v46 = vor.u32 %v2501_v41, %v2259_v40  ;;  %v2251_v52 = vld [vmem:[%s2796_s14 + $0x240] sm:$0xf] }
  0xdb   : >> { %1092 = vmatpush.bf16.msra.mxu0 %v1964_v5  ;;  %v2452_v47 = vld [vmem:[%s2796_s14 + $0xd4] sm:$0xf]  ;;  %v2069_v48 = vld [vmem:[%s2796_s14 + $0xd8] sm:$0xf0]  ;;  %v2008_v50 = vor.u32 %v2436_v42, %v2005_v43  ;;  %v2499_v53 = vld [vmem:[%s2796_s14 + $0x244] sm:$0xf0] }
  0xdc   : >> { %1110 = vmatpush.bf16.msra.mxu1 %v2028_v9  ;;  %v2468_v49 = vld [vmem:[%s2796_s14 + $0x154] sm:$0xf]  ;;  %v2133_v51 = vld [vmem:[%s2796_s14 + $0x158] sm:$0xf0]  ;;  %v2434_v54 = vld [vmem:[%s2796_s14 + $0x44] sm:$0xf]  ;;  %v2072_v56 = vor.u32 %v2452_v47, %v2069_v48  ;;  %v2252_v58 = vor.u32 %v2499_v53, %v2251_v52 }
  0xdd   : >> { %1128 = vmatpush.bf16.msra.mxu2 %v2092_v10  ;;  %v1997_v55 = vld [vmem:[%s2796_s14 + $0x48] sm:$0xf0]  ;;  %v2136_v57 = vor.u32 %v2468_v49, %v2133_v51  ;;  %v2450_v59 = vld [vmem:[%s2796_s14 + $0xc4] sm:$0xf]  ;;  %v2243_v0 = vld [vmem:[%s2796_s14 + $0x230] sm:$0xf] }
  0xde   : >> { %1146 = vmatpush.bf16.msra.mxu3 %v2156_v14  ;;  %1093 = vmatmul.bf16.vlgmr.msra.gmra.mxu0 %v2873_v21  ;;  %v2061_v60 = vld [vmem:[%s2796_s14 + $0xc8] sm:$0xf0]  ;;  %v2466_v61 = vld [vmem:[%s2796_s14 + $0x144] sm:$0xf]  ;;  %v2000_v62 = vor.u32 %v2434_v54, %v1997_v55  ;;  %v2497_v1 = vld [vmem:[%s2796_s14 + $0x234] sm:$0xf0] }
  0xdf   : >> { %1157 = vmatpush.bf16.msrb.mxu0 %v2276_v15  ;;  %1111 = vmatmul.bf16.vlgmr.msra.gmra.mxu1 %v2878_v26  ;;  %v2125_v63 = vld [vmem:[%s2796_s14 + $0x148] sm:$0xf0]  ;;  %v571_v2 = vld [vmem:[#allocation2 + $0x10] sm:$0xff]  ;;  %v1989_v4 = vld [vmem:[%s2796_s14 + $0x38] sm:$0xf0]  ;;  %v2064_v5 = vor.u32 %v2450_v59, %v2061_v60  ;;  %v2244_v12 = vor.u32 %v2497_v1, %v2243_v0 }
  0xe0   : >> { %1175 = vmatpush.bf16.msrb.mxu1 %v2024_v22  ;;  %1129 = vmatmul.bf16.vlgmr.msra.gmra.mxu2 %v2882_v28  ;;  %v2432_v3 = vld [vmem:[%s2796_s14 + $0x34] sm:$0xf]  ;;  %v2128_v10 = vor.u32 %v2466_v61, %v2125_v63  ;;  %v2053_v13 = vld [vmem:[%s2796_s14 + $0xb8] sm:$0xf0]  ;;  %v2921_v16 = vpack.c.bf16 %v571_v2, %v571_v2  ;;  %v2235_v22 = vld [vmem:[%s2796_s14 + $0x220] sm:$0xf] }
  0xe1   : >> { %1193 = vmatpush.bf16.msrb.mxu2 %v2088_v31  ;;  %1147 = vmatmul.bf16.vlgmr.msra.gmra.mxu3 %v2886_v32  ;;  %v574_v7 = vld [vmem:[#allocation2 + $0x11] sm:$0xff]  ;;  %v1992_v17 = vor.u32 %v2432_v3, %v1989_v4  ;;  %v2117_v19 = vld [vmem:[%s2796_s14 + $0x138] sm:$0xf0]  ;;  %v2495_v23 = vld [vmem:[%s2796_s14 + $0x224] sm:$0xf0] }
  0xe2   : >> { %1211 = vmatpush.bf16.msrb.mxu3 %v2152_v33  ;;  %v2916_v8 = vld [vmem:[#allocation2 + $0x12] sm:$0xff]  ;;  %v2926_v24 = vpack.c.bf16 %v574_v7, %v574_v7  ;;  %v2430_v29 = vld [vmem:[%s2796_s14 + $0x24] sm:$0xf]  ;;  %v1981_v30 = vld [vmem:[%s2796_s14 + $0x28] sm:$0xf0]  ;;  %v2236_v35 = vor.u32 %v2495_v23, %v2235_v22 }
  0xe3   : >> { %1158 = vmatpush.bf16.msrb.mxu0 %v2268_v34  ;;  %v2448_v9 = vld [vmem:[%s2796_s14 + $0xb4] sm:$0xf]  ;;  %v2930_v25 = vpack.c.bf16 %v2916_v8, %v2916_v8  ;;  %v2446_v36 = vld [vmem:[%s2796_s14 + $0xa4] sm:$0xf]  ;;  %v2045_v37 = vld [vmem:[%s2796_s14 + $0xa8] sm:$0xf0]  ;;  %v1984_v39 = vor.u32 %v2430_v29, %v1981_v30 }
  0xe4   : >> { %1176 = vmatpush.bf16.msrb.mxu1 %v2016_v38  ;;  %v580_v14 = vld [vmem:[#allocation2 + $0x13] sm:$0xff]  ;;  %v2056_v31 = vor.u32 %v2448_v9, %v2053_v13  ;;  %v2462_v38 = vld [vmem:[%s2796_s14 + $0x124] sm:$0xf]  ;;  %v2109_v40 = vld [vmem:[%s2796_s14 + $0x128] sm:$0xf0] }
  0xe5   : >> { %1194 = vmatpush.bf16.msrb.mxu2 %v2080_v44  ;;  %v2464_v15 = vld [vmem:[%s2796_s14 + $0x134] sm:$0xf]  ;;  %v2934_v33 = vpack.c.bf16 %v580_v14, %v580_v14  ;;  %v2227_v41 = vld [vmem:[%s2796_s14 + $0x210] sm:$0xf]  ;;  %v2493_v42 = vld [vmem:[%s2796_s14 + $0x214] sm:$0xf0]  ;;  %v2112_v47 = vor.u32 %v2462_v38, %v2109_v40 }
  0xe6   : >> { %1212 = vmatpush.bf16.msrb.mxu3 %v2144_v45  ;;  %v2120_v34 = vor.u32 %v2464_v15, %v2117_v19  ;;  %v2428_v43 = vld [vmem:[%s2796_s14 + $0x14] sm:$0xf]  ;;  %v1973_v44 = vld [vmem:[%s2796_s14 + $0x18] sm:$0xf0]  ;;  %v2048_v45 = vor.u32 %v2446_v36, %v2045_v37  ;;  %v2228_v48 = vor.u32 %v2493_v42, %v2227_v41  ;;  %v2219_v53 = vld [vmem:[%s2796_s14 + $0x200] sm:$0xf] }
  0xe7   : >> { %1159 = vmatpush.bf16.msrb.mxu0 %v2260_v46  ;;  %v2444_v46 = vld [vmem:[%s2796_s14 + $0x94] sm:$0xf]  ;;  %v2037_v49 = vld [vmem:[%s2796_s14 + $0x98] sm:$0xf0]  ;;  %v1976_v52 = vor.u32 %v2428_v43, %v1973_v44  ;;  %v2491_v54 = vld [vmem:[%s2796_s14 + $0x204] sm:$0xf0] }
  0xe8   : >> { %1177 = vmatpush.bf16.msrb.mxu1 %v2008_v50  ;;  %v2460_v50 = vld [vmem:[%s2796_s14 + $0x114] sm:$0xf]  ;;  %v2101_v51 = vld [vmem:[%s2796_s14 + $0x118] sm:$0xf0]  ;;  %v2426_v55 = vld [vmem:[%s2796_s14 + $0x4] sm:$0xf]  ;;  %v2040_v59 = vor.u32 %v2444_v46, %v2037_v49  ;;  %v2220_v63 = vor.u32 %v2491_v54, %v2219_v53 }
  0xe9   : >> { %1195 = vmatpush.bf16.msrb.mxu2 %v2072_v56  ;;  %v1965_v56 = vld [vmem:[%s2796_s14 + $0x8] sm:$0xf0]  ;;  %v2504_v60 = vld [vmem:[%s2796_s14 + $0x274] sm:$0xf]  ;;  %v2277_v61 = vld [vmem:[%s2796_s14 + $0x278] sm:$0xf0] }
  0xea   : >> { %1213 = vmatpush.bf16.msrb.mxu3 %v2136_v57  ;;  %v2488_v57 = vld [vmem:[%s2796_s14 + $0x1f4] sm:$0xf]  ;;  %v2442_v0 = vld [vmem:[%s2796_s14 + $0x84] sm:$0xf]  ;;  %v2029_v1 = vld [vmem:[%s2796_s14 + $0x88] sm:$0xf0]  ;;  %v1968_v2 = vor.u32 %v2426_v55, %v1965_v56 }
  0xeb   : >> { %1160 = vmatpush.bf16.msrb.mxu0 %v2252_v58  ;;  %v2213_v58 = vld [vmem:[%s2796_s14 + $0x1f8] sm:$0xf0]  ;;  %v2458_v3 = vld [vmem:[%s2796_s14 + $0x104] sm:$0xf]  ;;  %v2093_v4 = vld [vmem:[%s2796_s14 + $0x108] sm:$0xf0] }
  0xec   : >> { %1178 = vmatpush.bf16.msrb.mxu1 %v2000_v62  ;;  %v2104_v62 = vor.u32 %v2460_v50, %v2101_v51  ;;  %v581_v7 = vld [vmem:[#allocation2 + $0x4] sm:$0xff]  ;;  %v582_v9 = vld [vmem:[#allocation2 + $0xc] sm:$0xff]  ;;  %v2096_v13 = vor.u32 %v2458_v3, %v2093_v4  ;;  %v2484_v30 = vld [vmem:[%s2796_s14 + $0x1d4] sm:$0xf] }
  0xed   : >> { %1196 = vmatpush.bf16.msrb.mxu2 %v2064_v5  ;;  %v2216_v5 = vor.u32 %v2488_v57, %v2213_v58  ;;  %v2486_v14 = vld [vmem:[%s2796_s14 + $0x1e4] sm:$0xf]  ;;  %v2205_v15 = vld [vmem:[%s2796_s14 + $0x1e8] sm:$0xf0]  ;;  %v2480_v42 = vld [vmem:[%s2796_s14 + $0x1b4] sm:$0xf] }
  0xee   : >> { %1214 = vmatpush.bf16.msrb.mxu3 %v2128_v10  ;;  %1098 = vmatmul.bf16.gmra.mxu0 %v2921_v16  ;;  %v2280_v10 = vor.u32 %v2504_v60, %v2277_v61  ;;  %v2502_v19 = vld [vmem:[%s2796_s14 + $0x264] sm:$0xf]  ;;  %v2269_v22 = vld [vmem:[%s2796_s14 + $0x268] sm:$0xf0]  ;;  %v2208_v23 = vor.u32 %v2486_v14, %v2205_v15  ;;  %v2181_v43 = vld [vmem:[%s2796_s14 + $0x1b8] sm:$0xf0] }
  0xef   : >> { %1161 = vmatpush.bf16.msrb.mxu0 %v2244_v12  ;;  %1116 = vmatmul.bf16.gmra.mxu1 %v2926_v24  ;;  %v2032_v12 = vor.u32 %v2442_v0, %v2029_v1  ;;  %v2272_v29 = vor.u32 %v2502_v19, %v2269_v22  ;;  %v2482_v38 = vld [vmem:[%s2796_s14 + $0x1c4] sm:$0xf]  ;;  %v2253_v41 = vld [vmem:[%s2796_s14 + $0x248] sm:$0xf0]  ;;  %v2245_v44 = vld [vmem:[%s2796_s14 + $0x238] sm:$0xf0]  ;;  %v2184_v46 = vor.u32 %v2480_v42, %v2181_v43 }
  0xf0   : >> { %1179 = vmatpush.bf16.msrb.mxu1 %v1992_v17  ;;  %1134 = vmatmul.bf16.gmra.mxu2 %v2930_v25  ;;  %v2966_v17 = vpack.c.bf16 %v582_v9, %v581_v7  ;;  %v2498_v40 = vld [vmem:[%s2796_s14 + $0x244] sm:$0xf]  ;;  %v2173_v49 = vld [vmem:[%s2796_s14 + $0x1a8] sm:$0xf0]  ;;  %v2476_v55 = vld [vmem:[%s2796_s14 + $0x194] sm:$0xf] }
  0xf1   : >> { %1197 = vmatpush.bf16.msrb.mxu2 %v2056_v31  ;;  %1152 = vmatmul.bf16.gmra.mxu3 %v2934_v33  ;;  %v2197_v31 = vld [vmem:[%s2796_s14 + $0x1d8] sm:$0xf0]  ;;  %v2494_v51 = vld [vmem:[%s2796_s14 + $0x224] sm:$0xf]  ;;  %v2492_v57 = vld [vmem:[%s2796_s14 + $0x214] sm:$0xf] }
  0xf2   : >> { %1215 = vmatpush.bf16.msrb.mxu3 %v2120_v34  ;;  %v2500_v34 = vld [vmem:[%s2796_s14 + $0x254] sm:$0xf]  ;;  %v2200_v36 = vor.u32 %v2484_v30, %v2197_v31  ;;  %v2165_v56 = vld [vmem:[%s2796_s14 + $0x198] sm:$0xf0]  ;;  %v2474_v61 = vld [vmem:[%s2796_s14 + $0x184] sm:$0xf] }
  0xf3   : >> { %1162 = vmatpush.bf16.msrb.mxu0 %v2236_v35  ;;  %v2261_v35 = vld [vmem:[%s2796_s14 + $0x258] sm:$0xf0]  ;;  %v2221_v0 = vld [vmem:[%s2796_s14 + $0x208] sm:$0xf0] }
  0xf4   : >> { %1180 = vmatpush.bf16.msrb.mxu1 %v1984_v39  ;;  %v2264_v37 = vor.u32 %v2500_v34, %v2261_v35  ;;  %v2189_v39 = vld [vmem:[%s2796_s14 + $0x1c8] sm:$0xf0]  ;;  %v2229_v58 = vld [vmem:[%s2796_s14 + $0x218] sm:$0xf0] }
  0xf5   : >> { %1198 = vmatpush.bf16.msrb.mxu2 %v2048_v45  ;;  %v583_v45 = vld [vmem:[#allocation2 + $0x14] sm:$0xff]  ;;  %v2232_v60 = vor.u32 %v2492_v57, %v2229_v58 }
  0xf6   : >> { %1216 = vmatpush.bf16.msrb.mxu3 %v2112_v47  ;;  %v593_v50 = vpack.c.bf16 %v583_v45, %v583_v45  ;;  %v2344_v45 = vld [vmem:[%s3022_s27 + $0x70] sm:$0xf] }
  0xf7   : >> { %1163 = vmatpush.bf16.msrb.mxu0 %v2228_v48  ;;  %v2478_v48 = vld [vmem:[%s2796_s14 + $0x1a4] sm:$0xf] }
  0xf8   : >> { %1181 = vmatpush.bf16.msrb.mxu1 %v1976_v52  ;;  %v2237_v52 = vld [vmem:[%s2796_s14 + $0x228] sm:$0xf0]  ;;  %v2176_v53 = vor.u32 %v2478_v48, %v2173_v49  ;;  %v2346_v49 = vld [vmem:[%s3022_s27 + $0x78] sm:$0xf0] }
  0xf9   : >> { %1199 = vmatpush.bf16.msrb.mxu2 %v2040_v59  ;;  %v2240_v54 = vor.u32 %v2494_v51, %v2237_v52  ;;  %v2168_v59 = vor.u32 %v2476_v55, %v2165_v56  ;;  %v2520_v55 = vld [vmem:[%s3022_s27 + $0x64] sm:$0xf0]  ;;  %v2519_v56 = vld [vmem:[%s3022_s27 + $0x64] sm:$0xf] }
  0xfa   : >> { %1217 = vmatpush.bf16.msrb.mxu3 %v2104_v62  ;;  %v2157_v62 = vld [vmem:[%s2796_s14 + $0x188] sm:$0xf0] }
  0xfb   : >> { %1164 = vmatpush.bf16.msrb.mxu0 %v2220_v63  ;;  %v2490_v63 = vld [vmem:[%s2796_s14 + $0x204] sm:$0xf]  ;;  %v2160_v1 = vor.u32 %v2474_v61, %v2157_v62  ;;  %v2328_v61 = vld [vmem:[%s3022_s27 + $0x50] sm:$0xf]  ;;  %v2518_v62 = vld [vmem:[%s3022_s27 + $0x54] sm:$0xf0] }
  0xfc   : >> { %1182 = vmatpush.bf16.msrb.mxu1 %v1968_v2  ;;  %v2224_v2 = vor.u32 %v2490_v63, %v2221_v0  ;;  %v2517_v63 = vld [vmem:[%s3022_s27 + $0x54] sm:$0xf] }
  0xfd   : >> { %1200 = vmatpush.bf16.msrb.mxu2 %v2032_v12 }
  0xfe   : >> { %1218 = vmatpush.bf16.msrb.mxu3 %v2096_v13  ;;  %1165 = vmatmul.bf16.vlgmr.msrb.gmra.mxu0 %v2966_v17 }
  0xff   : >> { %1229 = vmatpush.bf16.msra.mxu0 %v2216_v5  ;;  %1183 = vmatmul.bf16.vlgmr.msrb.gmra.mxu1 %v2873_v21  ;;  %v2192_v21 = vor.u32 %v2482_v38, %v2189_v39 }
 0x100   : >> { %1247 = vmatpush.bf16.msra.mxu1 %v2280_v10  ;;  %1201 = vmatmul.bf16.vlgmr.msrb.gmra.mxu2 %v2878_v26  ;;  %v2256_v26 = vor.u32 %v2498_v40, %v2253_v41 }
 0x101   : >> { %1219 = vmatmul.bf16.vlgmr.msrb.gmra.mxu3 %v2882_v28  ;;  %v2496_v28 = vld [vmem:[%s2796_s14 + $0x234] sm:$0xf] }
 0x102   : >> { %v2248_v47 = vor.u32 %v2496_v28, %v2245_v44 }
 0x103   : >> { %1230 = vmatpush.bf16.msra.mxu0 %v2208_v23 }
 0x104   : >> { %1248 = vmatpush.bf16.msra.mxu1 %v2272_v29 }
 0x107   : >> { %1231 = vmatpush.bf16.msra.mxu0 %v2200_v36 }
 0x108   : >> { %1249 = vmatpush.bf16.msra.mxu1 %v2264_v37 }
 0x10b   : >> { %1232 = vmatpush.bf16.msra.mxu0 %v2192_v21 }
 0x10c   : >> { %1250 = vmatpush.bf16.msra.mxu1 %v2256_v26 }
 0x10e   : >> { %1170 = vmatmul.bf16.gmra.mxu0 %v593_v50 }
 0x10f   : >> { %1233 = vmatpush.bf16.msra.mxu0 %v2184_v46  ;;  %1188 = vmatmul.bf16.gmra.mxu1 %v2921_v16  ;;  %v679_v16 = vld [vmem:[%s678_s16] sm:$0x3]  ;;  %v2522_v46 = vld [vmem:[%s3022_s27 + $0x74] sm:$0xf0] }
 0x110   : >> { %1251 = vmatpush.bf16.msra.mxu1 %v2248_v47  ;;  %1206 = vmatmul.bf16.gmra.mxu2 %v2926_v24  ;;  %v681_v24 = vperm.slane %v679_v16, 0  ;;  %v2521_v47 = vld [vmem:[%s3022_s27 + $0x74] sm:$0xf]  ;;  %v2345_v48 = vor.u32 %v2522_v46, %v2344_v45  ;;  %v3041_v0 = vperm.slane %v679_v16, 1 }
 0x111   : >> { %1224 = vmatmul.bf16.gmra.mxu3 %v2930_v25 }
 0x112   : >> { %1436 = vmatpush.bf16.msra.mxu2 %v2345_v48 }
 0x113   : >> { %1234 = vmatpush.bf16.msra.mxu0 %v2176_v53 }
 0x114   : >> { %1252 = vmatpush.bf16.msra.mxu1 %v2240_v54  ;;  %v2336_v54 = vld [vmem:[%s3022_s27 + $0x60] sm:$0xf] }
 0x115   : >> { %v2337_v58 = vor.u32 %v2520_v55, %v2336_v54  ;;  %v2509_v54 = vld [vmem:[%s3022_s27 + $0x14] sm:$0xf] }
 0x117   : >> { %1235 = vmatpush.bf16.msra.mxu0 %v2168_v59  ;;  %v2338_v59 = vld [vmem:[%s3022_s27 + $0x68] sm:$0xf0]  ;;  %1437 = vmatpush.bf16.msra.mxu2 %v2337_v58  ;;  %v2288_v58 = vld [vmem:[%s3022_s27] sm:$0xf] }
 0x118   : >> { %1253 = vmatpush.bf16.msra.mxu1 %v2232_v60  ;;  %v2341_v60 = vor.u32 %v2519_v56, %v2338_v59  ;;  %v2298_v56 = vld [vmem:[%s3022_s27 + $0x18] sm:$0xf0]  ;;  %v2508_v59 = vld [vmem:[%s3022_s27 + $0x4] sm:$0xf0] }
 0x11b   : >> { %1236 = vmatpush.bf16.msra.mxu0 %v2160_v1  ;;  %v2329_v1 = vor.u32 %v2518_v62, %v2328_v61  ;;  %v2507_v61 = vld [vmem:[%s3022_s27 + $0x4] sm:$0xf]  ;;  %v2290_v62 = vld [vmem:[%s3022_s27 + $0x8] sm:$0xf0] }
 0x11c   : >> { %1254 = vmatpush.bf16.msra.mxu1 %v2224_v2  ;;  %v2330_v2 = vld [vmem:[%s3022_s27 + $0x58] sm:$0xf0] }
 0x11d   : >> { %1438 = vmatpush.bf16.msra.mxu2 %v2329_v1  ;;  %v2289_v1 = vor.u32 %v2508_v59, %v2288_v58 }
 0x11e   : >> { %1237 = vmatmul.bf16.vlgmr.msra.gmra.mxu0 %v2886_v32 }
 0x11f   : >> { %1255 = vmatmul.bf16.vlgmr.msra.gmra.mxu1 %v2966_v17 }
 0x12e   : >> { %1242 = vmatmul.bf16.gmra.mxu0 %v2934_v33 }
 0x12f   : >> { %1260 = vmatmul.bf16.gmra.mxu1 %v593_v50  ;;  %v2349_v50 = vor.u32 %v2521_v47, %v2346_v49  ;;  %v2296_v49 = vld [vmem:[%s3022_s27 + $0x10] sm:$0xf] }
 0x131   : >> { %1454 = vmatpush.bf16.msra.mxu3 %v2349_v50  ;;  %v2510_v50 = vld [vmem:[%s3022_s27 + $0x14] sm:$0xf0] }
 0x132   : >> { %v2297_v55 = vor.u32 %v2510_v50, %v2296_v49 }
 0x135   : >> { %1455 = vmatpush.bf16.msra.mxu3 %v2341_v60  ;;  %v2301_v60 = vor.u32 %v2509_v54, %v2298_v56 }
 0x15b   : >> { %v1094_v25 = vpop.f32.mrf.mxu0 }
 0x15c   : >> { %v1095_v3 = vadd.f32 %v1094_v25, %v681_v24  ;;  %v1112_v4 = vpop.f32.mrf.mxu1 }
 0x15e   : >> { %v1113_v5 = vadd.f32 %v1112_v4, %v1095_v3 }
 0x163   : >> { %v1130_v7 = vpop.f32.mrf.mxu2  ;;  %v1096_v10 = vpop.f32.mrf.mxu0 }
 0x164   : >> { %v1131_v9 = vadd.f32 %v1130_v7, %v1113_v5  ;;  %v1148_v12 = vpop.f32.mrf.mxu3  ;;  %v1097_v13 = vadd.f32 %v1096_v10, %v681_v24  ;;  %v1114_v32 = vpop.f32.mrf.mxu1  ;;  %v2320_v5 = vld [vmem:[%s3022_s27 + $0x40] sm:$0xf]  ;;  %v2516_v7 = vld [vmem:[%s3022_s27 + $0x44] sm:$0xf0] }
 0x166   : >> { %v3008_v14 = vadd.f32 %v1148_v12, %v1131_v9  ;;  %v1115_v15 = vadd.f32 %v1114_v32, %v1097_v13  ;;  %v2515_v9 = vld [vmem:[%s3022_s27 + $0x44] sm:$0xf]  ;;  %v2321_v12 = vor.u32 %v2516_v7, %v2320_v5  ;;  %v2322_v13 = vld [vmem:[%s3022_s27 + $0x48] sm:$0xf0] }
 0x167   : >> { %v2325_v32 = vor.u32 %v2515_v9, %v2322_v13 }
 0x168   : >> { %1439 = vmatpush.bf16.msra.mxu2 %v2321_v12 }
 0x16b   : >> { %v1132_v33 = vpop.f32.mrf.mxu2  ;;  %v1099_v19 = vpop.f32.mrf.mxu0 }
 0x16c   : >> { %v1133_v17 = vadd.f32 %v1132_v33, %v1115_v15  ;;  %v1150_v22 = vpop.f32.mrf.mxu3  ;;  %v1100_v23 = vadd.f32 %v1099_v19, %v681_v24  ;;  %v1117_v29 = vpop.f32.mrf.mxu1  ;;  %v2333_v24 = vor.u32 %v2517_v63, %v2330_v2  ;;  %v2312_v33 = vld [vmem:[%s3022_s27 + $0x30] sm:$0xf]  ;;  %v2513_v19 = vld [vmem:[%s3022_s27 + $0x34] sm:$0xf]  ;;  %v2293_v2 = vor.u32 %v2507_v61, %v2290_v62 }
 0x16e   : >> { %v3010_v30 = vadd.f32 %v1150_v22, %v1133_v17  ;;  %v1118_v31 = vadd.f32 %v1117_v29, %v1100_v23  ;;  %1456 = vmatpush.bf16.msra.mxu3 %v2333_v24  ;;  %v2514_v17 = vld [vmem:[%s3022_s27 + $0x34] sm:$0xf0]  ;;  %v2314_v23 = vld [vmem:[%s3022_s27 + $0x38] sm:$0xf0] }
 0x16f   : >> { %v2313_v22 = vor.u32 %v2514_v17, %v2312_v33  ;;  %v2317_v29 = vor.u32 %v2513_v19, %v2314_v23 }
 0x171   : >> { %1440 = vmatpush.bf16.msra.mxu2 %v2313_v22 }
 0x172   : >> { %1457 = vmatpush.bf16.msra.mxu3 %v2325_v32 }
 0x173   : >> { %v1135_v34 = vpop.f32.mrf.mxu2  ;;  %v1101_v36 = vpop.f32.mrf.mxu0 }
 0x174   : >> { %v1136_v35 = vadd.f32 %v1135_v34, %v1118_v31  ;;  %v1153_v37 = vpop.f32.mrf.mxu3  ;;  %v1119_v38 = vpop.f32.mrf.mxu1 }
 0x175   : >> { %v2512_v38 = vld [vmem:[%s3022_s27 + $0x24] sm:$0xf0] }
 0x176   : >> { %v3012_v39 = vadd.f32 %v1153_v37, %v1136_v35  ;;  %1458 = vmatpush.bf16.msra.mxu3 %v2317_v29  ;;  %v2304_v37 = vld [vmem:[%s3022_s27 + $0x20] sm:$0xf] }
 0x177   : >> { %v2305_v45 = vor.u32 %v2512_v38, %v2304_v37 }
 0x179   : >> { %1441 = vmatpush.bf16.msra.mxu2 %v2305_v45 }
 0x17b   : >> { %v1137_v40 = vpop.f32.mrf.mxu2  ;;  %v3014_v21 = vpop.f32.mrf.mxu0 }
 0x17c   : >> { %v1155_v41 = vpop.f32.mrf.mxu3  ;;  %v1184_v26 = vpop.f32.mrf.mxu1  ;;  %v2511_v40 = vld [vmem:[%s3022_s27 + $0x24] sm:$0xf] }
 0x17d   : >> { %v1185_v10 = vadd.f32 %v1184_v26, %v3041_v0  ;;  %1442 = vmatpush.bf16.msra.mxu2 %v2297_v55 }
 0x181   : >> { %1443 = vmatpush.bf16.msra.mxu2 %v2289_v1 }
 0x183   : >> { %v1202_v42 = vpop.f32.mrf.mxu2  ;;  %v3017_v43 = vpop.f32.mrf.mxu0 }
 0x184   : >> { %v1220_v28 = vpop.f32.mrf.mxu3  ;;  %v1186_v44 = vpop.f32.mrf.mxu1  ;;  %v1203_v15 = vadd.f32 %v1202_v42, %v1185_v10 }
 0x185   : >> { %v1187_v41 = vadd.f32 %v1186_v44, %v3041_v0 }
 0x186   : >> { %v1221_v31 = vadd.f32 %v1220_v28, %v1203_v15  ;;  %v2306_v28 = vld [vmem:[%s3022_s27 + $0x28] sm:$0xf0] }
 0x187   : >> { %v2309_v46 = vor.u32 %v2511_v40, %v2306_v28 }
 0x189   : >> { %1459 = vmatpush.bf16.msra.mxu3 %v2309_v46 }
 0x18b   : >> { %v1204_v51 = vpop.f32.mrf.mxu2  ;;  %v3028_v52 = vpop.f32.mrf.mxu0 }
 0x18c   : >> { %v3030_v53 = vpop.f32.mrf.mxu3  ;;  %v3035_v57 = vpop.f32.mrf.mxu1  ;;  %v1205_v47 = vadd.f32 %v1204_v51, %v1187_v41  ;;  %v1172_v62 = vadd.f32 %v3028_v52, %v3012_v39  ;;  %v1350_v39 = vld [vmem:[%s1349_s26] sm:$0x3] }
 0x18d   : >> { %1460 = vmatpush.bf16.msra.mxu3 %v2301_v60  ;;  %v1190_v24 = vadd.f32 %v3035_v57, %v3041_v0  ;;  %v1352_v52 = vperm.slane %v1350_v39, 0 }
 0x18e   : >> { %v1223_v63 = vadd.f32 %v3030_v53, %v1205_v47 }
 0x191   : >> { %1461 = vmatpush.bf16.msra.mxu3 %v2293_v2 }
 0x193   : >> { %v1207_v25 = vpop.f32.mrf.mxu2  ;;  %v1173_v3 = vpop.f32.mrf.mxu0 }
 0x194   : >> { %v3044_v4 = vpop.f32.mrf.mxu3  ;;  %v1191_v16 = vpop.f32.mrf.mxu1  ;;  %v1208_v7 = vadd.f32 %v1207_v25, %v1190_v24 }
 0x196   : >> { %v1226_v53 = vadd.f32 %v3044_v4, %v1208_v7  ;;  %v1167_v4 = vadd.f32 %v3014_v21, %v3008_v14 }
 0x19b   : >> { %v1209_v34 = vpop.f32.mrf.mxu2  ;;  %v1238_v35 = vpop.f32.mrf.mxu0 }
 0x19c   : >> { %v1227_v36 = vpop.f32.mrf.mxu3  ;;  %v1239_v26 = vadd.f32 %v1238_v35, %v1221_v31  ;;  %v1256_v42 = vpop.f32.mrf.mxu1 }
 0x19d   : >> { %v1169_v36 = vadd.f32 %v3017_v43, %v3010_v30 }
 0x19e   : >> { %v1257_v48 = vadd.f32 %v1256_v42, %v1239_v26 }
 0x1a0   : >> { %v2281_v44 = vmul.f32 -1.442695, %v1257_v48 }
 0x1a2   : >> { %2595 = vpow2.f32 %v2281_v44 }
 0x1a3   : >> { %v1240_v51 = vpop.f32.mrf.mxu0 }
 0x1a4   : >> { %v1241_v3 = vadd.f32 %v1240_v51, %v1223_v63  ;;  %v1258_v5 = vpop.f32.mrf.mxu1 }
 0x1a6   : >> { %v1259_v9 = vadd.f32 %v1258_v5, %v1241_v3 }
 0x1a8   : >> { %v2596_v10 = vpop.eup %2595  ;;  %v2282_v16 = vmul.f32 -1.442695, %v1259_v9 }
 0x1a9   : >> { %v1277_v12 = vadd.f32 1.0, %v2596_v10  ;;  %v1353_v10 = vperm.slane %v1350_v39, 1  ;;  %v2368_v39 = vld [vmem:[%s3314_s9 + $0x20] sm:$0xf] (%p565_p7) }
 0x1aa   : >> { %2597 = vpow2.f32 %v2282_v16 }
 0x1ab   : >> { %2599 = vrcp.f32 %v1277_v12  ;;  %v1243_v13 = vpop.f32.mrf.mxu0  ;;  %v1291_v41 = vand.u32 2147483648, %v1277_v12  ;;  %vm1285_vm4 = vweird.f32 %v1277_v12  ;;  %v1289_v42 = vand.u32 2147483647, %v1277_v12 }
 0x1ac   : >> { %v1244_v32 = vadd.f32 %v1243_v13, %v1226_v53  ;;  %v1261_v15 = vpop.f32.mrf.mxu1  ;;  %v1481_v53 = vld [vmem:[#allocation3 + $0x10] sm:$0xff] }
 0x1ad   : >> { %v1292_v21 = vor.u32 1.1754944e-38, %v1291_v41  ;;  %vm1290_vm8 = vcmp.eq.f32.partialorder %v1289_v42, 8.507059e+37  ;;  %v2535_v42 = vld [vmem:[%s3314_s9 + $0x64] sm:$0xf] (%p565_p7) }
 0x1ae   : >> { %v1262_v33 = vadd.f32 %v1261_v15, %v1244_v32 }
 0x1b0   : >> { %v2598_v17 = vpop.eup %2597  ;;  %v2283_v19 = vmul.f32 -1.442695, %v1262_v33 }
 0x1b1   : >> { %v2600_v57 = vpop.eup %2599  ;;  %v1278_v0 = vadd.f32 1.0, %v2598_v17 }
 0x1b2   : >> { %v1281_v22 = vmul.f32 %v2600_v57, %v1277_v12  ;;  %2601 = vpow2.f32 %v2283_v19  ;;  %vm1286_vm3 = vweird.f32 %v2600_v57 }
 0x1b3   : >> { %2603 = vrcp.f32 %v1278_v0  ;;  %v1245_v25 = vpop.f32.mrf.mxu0  ;;  %vm1287_vm5 = vmor %vm1285_vm4, %vm1286_vm3  ;;  %v1306_v45 = vand.u32 2147483648, %v1278_v0  ;;  %v1304_v14 = vand.u32 2147483647, %v1278_v0  ;;  %vm1300_vm7 = vweird.f32 %v1278_v0 }
 0x1b4   : >> { %v1282_v23 = vsub.f32 1.0, %v1281_v22  ;;  %v1263_v29 = vpop.f32.mrf.mxu1 }
 0x1b5   : >> { %v1307_v48 = vor.u32 1.1754944e-38, %v1306_v45  ;;  %vm1305_vm10 = vcmp.eq.f32.partialorder %v1304_v14, 8.507059e+37  ;;  %v2538_v14 = vld [vmem:[%s3314_s9 + $0x74] sm:$0xf0] (%p565_p7) }
 0x1b6   : >> { %v1283_v31 = vmul.f32 %v2600_v57, %v1282_v23 }
 0x1b8   : >> { %v2602_v34 = vpop.eup %2601  ;;  %v1284_v40 = vadd.f32 %v2600_v57, %v1283_v31 }
 0x1b9   : >> { %v2604_v35 = vpop.eup %2603  ;;  %v1279_v37 = vadd.f32 1.0, %v2602_v34 }
 0x1ba   : >> { %v1296_v38 = vmul.f32 %v2604_v35, %v1278_v0  ;;  %v1288_v46 = vsel %vm1287_vm5, %v2600_v57, %v1284_v40  ;;  %vm1301_vm6 = vweird.f32 %v2604_v35  ;;  %v1482_v0 = vld [vmem:[#allocation3] sm:$0xff] }
 0x1bb   : >> { %2605 = vrcp.f32 %v1279_v37  ;;  %v1293_v47 = vsel %vm1290_vm8, %v1292_v21, %v1288_v46  ;;  %vm1302_vm9 = vmor %vm1300_vm7, %vm1301_vm6  ;;  %v1321_v1 = vand.u32 2147483648, %v1279_v37  ;;  %vm1315_vm12 = vweird.f32 %v1279_v37  ;;  %v2408_v46 = vld [vmem:[%s3314_s9 + $0x70] sm:$0xf] (%p565_p7) }
 0x1bc   : >> { %2607 = vtanh.f32 %v1167_v4  ;;  %v1297_v26 = vsub.f32 1.0, %v1296_v38  ;;  %v1319_v51 = vand.u32 2147483647, %v1279_v37  ;;  %v2409_v21 = vor.u32 (%p565_p7), %v2538_v14, %v2408_v46 }
 0x1bd   : >> { %2609 = vtanh.f32 %v1169_v36  ;;  %v1322_v24 = vor.u32 1.1754944e-38, %v1321_v1  ;;  %v2378_v1 = vld [vmem:[%s3314_s9 + $0x38] sm:$0xf0] (%p565_p7) }
 0x1be   : >> { %v1298_v28 = vmul.f32 %v2604_v35, %v1297_v26  ;;  %2611 = vtanh.f32 %v1172_v62  ;;  %vm1320_vm14 = vcmp.eq.f32.partialorder %v1319_v51, 8.507059e+37  ;;  %1600 = vmatpush.bf16.msra.mxu0 (%p565_p7), %v2409_v21 }
 0x1c0   : >> { %v1299_v30 = vadd.f32 %v2604_v35, %v1298_v28  ;;  %v2402_v28 = vld [vmem:[%s3314_s9 + $0x68] sm:$0xf0] (%p565_p7) }
 0x1c1   : >> { %v2606_v43 = vpop.eup %2605 }
 0x1c2   : >> { %v2608_v49 = vpop.eup %2607  ;;  %v1303_v50 = vsel %vm1302_vm9, %v2604_v35, %v1299_v30  ;;  %v1311_v54 = vmul.f32 %v2606_v43, %v1279_v37  ;;  %vm1316_vm11 = vweird.f32 %v2606_v43  ;;  %v2400_v30 = vld [vmem:[%s3314_s9 + $0x60] sm:$0xf] (%p565_p7) }
 0x1c3   : >> { %v2610_v55 = vpop.eup %2609  ;;  %v1308_v56 = vsel %vm1305_vm10, %v1307_v48, %v1303_v50  ;;  %v1325_v58 = vmul.f32 %v2608_v49, %v1293_v47  ;;  %vm1317_vm13 = vmor %vm1315_vm12, %vm1316_vm11  ;;  %v2536_v47 = vld [vmem:[%s3314_s9 + $0x64] sm:$0xf0] (%p565_p7)  ;;  %v2533_v48 = vld [vmem:[%s3314_s9 + $0x54] sm:$0xf] (%p565_p7) }
 0x1c4   : >> { %v1326_v59 = vmul.f32 %v2610_v55, %v1308_v56  ;;  %v1312_v44 = vsub.f32 1.0, %v1311_v54  ;;  %v2612_v5 = vpop.eup %2611  ;;  %v2394_v49 = vld [vmem:[%s3314_s9 + $0x58] sm:$0xf0] (%p565_p7)  ;;  %v2401_v50 = vor.u32 (%p565_p7), %v2536_v47, %v2400_v30  ;;  %v2392_v54 = vld [vmem:[%s3314_s9 + $0x50] sm:$0xf] (%p565_p7) }
 0x1c5   : > { %v2534_v55 = vld [vmem:[%s3314_s9 + $0x54] sm:$0xf0] (%p565_p7)  ;;  %v2397_v56 = vor.u32 (%p565_p7), %v2533_v48, %v2394_v49 }
 0x1c6   : >> { %v1328_v60 = vpack.c.bf16 %v1326_v59, %v1325_v58  ;;  %v1313_v61 = vmul.f32 %v2606_v43, %v1312_v44  ;;  %1601 = vmatpush.bf16.msra.mxu0 (%p565_p7), %v2401_v50  ;;  %v2531_v58 = vld [vmem:[%s3314_s9 + $0x44] sm:$0xf] (%p565_p7)  ;;  %v2386_v59 = vld [vmem:[%s3314_s9 + $0x48] sm:$0xf0] (%p565_p7)  ;;  %v2393_v44 = vor.u32 (%p565_p7), %v2534_v55, %v2392_v54 }
 0x1c7   : > { %v2389_v62 = vor.u32 (%p565_p7), %v2531_v58, %v2386_v59  ;;  %v1642_v55 = vld [vmem:[%s2749_s21] sm:$0xff] (%p565_p7) }
 0x1c8   : >> { %1444 = vmatmul.bf16.vlgmr.msra.gmra.mxu2 %v1328_v60  ;;  %1462 = vmatmul.bf16.vlgmr.msra.gmra.mxu3 %v1328_v60  ;;  %v1314_v63 = vadd.f32 %v2606_v43, %v1313_v61  ;;  %v2384_v60 = vld [vmem:[%s3314_s9 + $0x40] sm:$0xf] (%p565_p7)  ;;  %v2532_v61 = vld [vmem:[%s3314_s9 + $0x44] sm:$0xf0] (%p565_p7) }
 0x1c9   : > { %2547 = vmatpush.bf16.msra.mxu2 (%p565_p7), %v2409_v21  ;;  %v2385_v51 = vor.u32 (%p565_p7), %v2532_v61, %v2384_v60 }
 0x1ca   : >> { %v1318_v2 = vsel %vm1317_vm13, %v2606_v43, %v1314_v63  ;;  %v2405_v43 = vor.u32 (%p565_p7), %v2535_v42, %v2402_v28  ;;  %1602 = vmatpush.bf16.msra.mxu0 (%p565_p7), %v2393_v44  ;;  %v2529_v63 = vld [vmem:[%s3314_s9 + $0x34] sm:$0xf] (%p565_p7) }
 0x1cb   : >> { %v1323_v3 = vsel %vm1320_vm14, %v1322_v24, %v1318_v2  ;;  %v2376_v2 = vld [vmem:[%s3314_s9 + $0x30] sm:$0xf] (%p565_p7)  ;;  %v2530_v24 = vld [vmem:[%s3314_s9 + $0x34] sm:$0xf0] (%p565_p7) }
 0x1cc   : >> { %v1327_v7 = vmul.f32 %v2612_v5, %v1323_v3  ;;  %v2381_v3 = vor.u32 (%p565_p7), %v2529_v63, %v2378_v1  ;;  %v2527_v5 = vld [vmem:[%s3314_s9 + $0x24] sm:$0xf] (%p565_p7) }
 0x1cd   : > { %2548 = vmatpush.bf16.msra.mxu2 (%p565_p7), %v2401_v50 }
 0x1ce   : >> { %v1329_v9 = vpack.c.bf16 %v1327_v7, %v1327_v7  ;;  %1603 = vmatpush.bf16.msra.mxu0 (%p565_p7), %v2385_v51  ;;  %v2370_v7 = vld [vmem:[%s3314_s9 + $0x28] sm:$0xf0] (%p565_p7) }
 0x1d1   : > { %2549 = vmatpush.bf16.msra.mxu2 (%p565_p7), %v2393_v44 }
 0x1d5   : > { %2550 = vmatpush.bf16.msra.mxu2 (%p565_p7), %v2385_v51 }
 0x1d8   : >> { %1449 = vmatmul.bf16.gmra.mxu2 %v1329_v9  ;;  %1467 = vmatmul.bf16.gmra.mxu3 %v1329_v9  ;;  %v2377_v9 = vor.u32 (%p565_p7), %v2530_v24, %v2376_v2  ;;  %v1643_v2 = vld [vmem:[%s2749_s21 + $0x8] sm:$0xff] (%p565_p7) }
 0x1da   : > { %1604 = vmatpush.bf16.msra.mxu0 (%p565_p7), %v2377_v9  ;;  %2551 = vmatpush.bf16.msra.mxu2 (%p565_p7), %v2377_v9 }
 0x24b   : >> { %v1445_v16 = vpop.f32.mrf.mxu2  ;;  %v1463_v12 = vpop.f32.mrf.mxu3 }
 0x24c   : >> { %v1446_v13 = vadd.f32 %v1445_v16, %v1352_v52  ;;  %v1464_v32 = vadd.f32 %v1463_v12, %v1353_v10  ;;  %v2525_v16 = vld [vmem:[%s3314_s9 + $0x14] sm:$0xf] (%p565_p7)  ;;  %v2362_v12 = vld [vmem:[%s3314_s9 + $0x18] sm:$0xf0] (%p565_p7) }
 0x24e   : >> { %v1472_v15 = vadd.f32 %v1446_v13, %v2864_v6  ;;  %v1484_v33 = vadd.f32 %v1481_v53, %v1464_v32  ;;  %v1483_v6 = vld [vmem:[#allocation3 + $0x8] sm:$0xff]  ;;  %v2360_v13 = vld [vmem:[%s3314_s9 + $0x10] sm:$0xf] (%p565_p7)  ;;  %v2526_v32 = vld [vmem:[%s3314_s9 + $0x14] sm:$0xf0] (%p565_p7) }
 0x250   : >> { %v1475_v17 = vmul.f32 %v2778_v18, %v1472_v15  ;;  %1487 = vst [vmem:[#allocation3 + $0x10] sm:$0xff] %v1484_v33  ;;  %v2365_v15 = vor.u32 (%p565_p7), %v2525_v16, %v2362_v12 }
 0x252   : >> { %1478 = vst [vmem:[#allocation2 + $0x2] sm:$0xff] %v1475_v17 }
 0x253   : >> { %v1447_v19 = vpop.f32.mrf.mxu2  ;;  %v1465_v57 = vpop.f32.mrf.mxu3 }
 0x254   : >> { %v1448_v22 = vadd.f32 %v1447_v19, %v1352_v52  ;;  %v1466_v25 = vadd.f32 %v1465_v57, %v1353_v10  ;;  %v2523_v57 = vld [vmem:[%s3314_s9 + $0x4] sm:$0xf] (%p565_p7) }
 0x256   : >> { %v1473_v23 = vadd.f32 %v1448_v22, %v2868_v11  ;;  %v1485_v29 = vadd.f32 %v1482_v0, %v1466_v25  ;;  %v2537_v11 = vld [vmem:[%s3314_s9 + $0x74] sm:$0xf] (%p565_p7)  ;;  %v2354_v0 = vld [vmem:[%s3314_s9 + $0x8] sm:$0xf0] (%p565_p7)  ;;  %v2361_v22 = vor.u32 (%p565_p7), %v2526_v32, %v2360_v13  ;;  %v2352_v25 = vld [vmem:[%s3314_s9] sm:$0xf] (%p565_p7) }
 0x257   : > { %v1490_v33 = vld [vmem:[#allocation3 + $0x10] sm:$0xff] (%p565_p7) }
 0x258   : >> { %v1476_v31 = vmul.f32 %v2784_v27, %v1473_v23  ;;  %1488 = vst [vmem:[#allocation3] sm:$0xff] %v1485_v29  ;;  %v2524_v23 = vld [vmem:[%s3314_s9 + $0x4] sm:$0xf0] (%p565_p7)  ;;  %v1493_v29 = vmul.f32 (%p565_p7), %v2778_v18, %v1490_v33 }
 0x25a   : >> { %1479 = vst [vmem:[#allocation2 + $0xa] sm:$0xff] %v1476_v31 }
 0x25b   : >> { %v1450_v34 = vpop.f32.mrf.mxu2  ;;  %v1468_v4 = vpop.f32.mrf.mxu3 }
 0x25c   : >> { %v1451_v35 = vadd.f32 %v1450_v34, %v1352_v52  ;;  %v1469_v36 = vadd.f32 %v1468_v4, %v1353_v10  ;;  %v2528_v52 = vld [vmem:[%s3314_s9 + $0x24] sm:$0xf0] (%p565_p7)  ;;  %v2373_v10 = vor.u32 (%p565_p7), %v2527_v5, %v2370_v7  ;;  %v2357_v4 = vor.u32 (%p565_p7), %v2523_v57, %v2354_v0  ;;  %v1644_v5 = vld [vmem:[%s2749_s21 + $0x10] sm:$0xff] (%p565_p7) }
 0x25d   : > { %v2369_v53 = vor.u32 (%p565_p7), %v2528_v52, %v2368_v39 }
 0x25e   : >> { %v1474_v37 = vadd.f32 %v1451_v35, %v2916_v8  ;;  %v1486_v38 = vadd.f32 %v1483_v6, %v1469_v36  ;;  %v2410_v8 = vld [vmem:[%s3314_s9 + $0x78] sm:$0xf0] (%p565_p7)  ;;  %v2353_v6 = vor.u32 (%p565_p7), %v2524_v23, %v2352_v25 }
 0x25f   : > { %567 = sbr.rel (!%p565_p7) target bundleno = 185 (0xb9), region = 116  ;;  %v2413_v45 = vor.u32 (%p565_p7), %v2537_v11, %v2410_v8  ;;  %v1491_v17 = vld [vmem:[#allocation3] sm:$0xff] (%p565_p7)  ;;  %1605 = vmatpush.bf16.msra.mxu0 (%p565_p7), %v2369_v53  ;;  %2552 = vmatpush.bf16.msra.mxu2 (%p565_p7), %v2369_v53 }
 0x260   : >> { %v1477_v40 = vmul.f32 %v2780_v20, %v1474_v37  ;;  %1489 = vst [vmem:[#allocation3 + $0x8] sm:$0xff] %v1486_v38  ;;  %v1494_v31 = vmul.f32 (%p565_p7), %v2784_v27, %v1491_v17  ;;  %v1514_v37 = vld [vmem:[%s3315_s10] sm:$0x3] (%p565_p7) }
 0x261   : > { %1618 = vmatpush.bf16.msra.mxu1 (%p565_p7), %v2413_v45  ;;  %2555 = vmatpush.bf16.msra.mxu3 (%p565_p7), %v2413_v45  ;;  %v1517_v38 = vperm.slane (%p565_p7), %v1514_v37, 1 }
 0x262   : >> { %1480 = vst [vmem:[#allocation2 + $0x12] sm:$0xff] %v1477_v40  ;;  %v1496_v35 = vpack.c.bf16 (%p565_p7), %v1494_v31, %v1493_v29  ;;  %v1516_v40 = vperm.slane (%p565_p7), %v1514_v37, 0 }
 0x263   : >> { %v1452_v41 = vpop.f32.mrf.mxu2  ;;  %v1470_v26 = vpop.f32.mrf.mxu3  ;;  %1606 = vmatpush.bf16.msra.mxu0 (%p565_p7), %v2361_v22  ;;  %2553 = vmatpush.bf16.msra.mxu2 (%p565_p7), %v2361_v22 }
 0x265   : > { %1619 = vmatpush.bf16.msra.mxu1 %v2405_v43  ;;  %2556 = vmatpush.bf16.msra.mxu3 %v2405_v43 }
 0x267   : > { %v1492_v19 = vld [vmem:[#allocation3 + $0x8] sm:$0xff]  ;;  %1607 = vmatpush.bf16.msra.mxu0 %v2353_v6  ;;  %2554 = vmatpush.bf16.msra.mxu2 %v2353_v6 }
 0x268   : > { %v1495_v34 = vmul.f32 %v2780_v20, %v1492_v19 }
 0x269   : > { %1620 = vmatpush.bf16.msra.mxu1 %v2397_v56  ;;  %2557 = vmatpush.bf16.msra.mxu3 %v2397_v56 }
 0x26a   : > { %v1497_v36 = vpack.c.bf16 %v1495_v34, %v1495_v34  ;;  %1608 = vmatmul.bf16.vlgmr.msra.gmra.mxu0 %v1496_v35 }
 0x26c   : > { %1613 = vmatmul.bf16.vlgmr.msra.gmra.mxu2 %v1497_v36 }
 0x26d   : > { %1621 = vmatpush.bf16.msra.mxu1 %v2389_v62  ;;  %2558 = vmatpush.bf16.msra.mxu3 %v2389_v62 }
 0x271   : > { %1622 = vmatpush.bf16.msra.mxu1 %v2381_v3  ;;  %2559 = vmatpush.bf16.msra.mxu3 %v2381_v3 }
 0x275   : > { %1623 = vmatpush.bf16.msra.mxu1 %v2373_v10  ;;  %2560 = vmatpush.bf16.msra.mxu3 %v2373_v10 }
 0x279   : > { %1624 = vmatpush.bf16.msra.mxu1 %v2365_v15  ;;  %2561 = vmatpush.bf16.msra.mxu3 %v2365_v15 }
 0x27d   : > { %1625 = vmatpush.bf16.msra.mxu1 %v2357_v4  ;;  %2562 = vmatpush.bf16.msra.mxu3 %v2357_v4 }
 0x280   : > { %1626 = vmatmul.bf16.vlgmr.msra.gmra.mxu1 %v1496_v35  ;;  %1631 = vmatmul.bf16.vlgmr.msra.gmra.mxu3 %v1497_v36 }
 0x2e7   : > { %v1609_v11 = vpop.f32.mrf.mxu0 }
 0x2e8   : > { %v1610_v8 = vadd.f32 %v1609_v11, %v1516_v40 }
 0x2ea   : > { %v1636_v45 = vmul.f32 %v2778_v18, %v1610_v8 }
 0x2ec   : > { %1692 = vxpose.xlu1.b32.start [1/3] (short) %v1636_v45, 128 }
 0x2ef   : > { %v1614_v21 = vpop.f32.mrf.mxu2  ;;  %v1611_v48 = vpop.f32.mrf.mxu0 }
 0x2f0   : > { %v1612_v49 = vadd.f32 %v1611_v48, %v1516_v40  ;;  %v1615_v61 = vadd.f32 %v1614_v21, %v1516_v40 }
 0x2f2   : > { %v1638_v56 = vmul.f32 %v2784_v27, %v1612_v49  ;;  %v1640_v51 = vmul.f32 %v2780_v20, %v1615_v61 }
 0x2f4   : > { %1693 = vxpose.xlu1.b32.cont [2/3] (short) %v1638_v56, 128 }
 0x2f7   : > { %v1616_v62 = vpop.f32.mrf.mxu2 }
 0x2fc   : > { %1694 = vxpose.xlu1.b32.end [3/3] (short) %v1640_v51, 128 }
 0x2fd   : > { %v1627_v41 = vpop.f32.mrf.mxu1 }
 0x2fe   : > { %v1628_v26 = vadd.f32 %v1627_v41, %v1517_v38 }
 0x300   : > { %v1637_v42 = vmul.f32 %v2778_v18, %v1628_v26 }
 0x302   : > { %v1645_v28 = vmul.f32 1.442695, %v1637_v42  ;;  %1724 = vxpose.xlu2.b32.start [1/3] (short) %v1637_v42, 128 }
 0x303   : > { %v1632_v46 = vpop.f32.mrf.mxu3 }
 0x304   : > { %2613 = vpow2.f32 %v1645_v28  ;;  %v1633_v14 = vadd.f32 %v1632_v46, %v1517_v38 }
 0x305   : > { %v1629_v30 = vpop.f32.mrf.mxu1 }
 0x306   : > { %v1630_v43 = vadd.f32 %v1629_v30, %v1517_v38  ;;  %v1641_v47 = vmul.f32 %v2780_v20, %v1633_v14 }
 0x308   : > { %v1639_v50 = vmul.f32 %v2784_v27, %v1630_v43  ;;  %v1649_v54 = vmul.f32 1.442695, %v1641_v47 }
 0x30a   : > { %v2614_v58 = vpop.eup %2613  ;;  %v1647_v59 = vmul.f32 1.442695, %v1639_v50  ;;  %1725 = vxpose.xlu2.b32.cont [2/3] (short) %v1639_v50, 128  ;;  %2615 = vpow2.f32 %v1649_v54 }
 0x30b   : > { %v1634_v44 = vpop.f32.mrf.mxu3  ;;  %v1651_v60 = vmul.f32 %v2614_v58, %v1642_v55 }
 0x30c   : > { %2617 = vpow2.f32 %v1647_v59 }
 0x30d   : > { %v1654_v63 = vmul.f32 %v2778_v18, %v1651_v60 }
 0x30f   : > { %v1657_v1 = vadd.f32 %v1654_v63, %v1636_v45 }
 0x310   : > { %v2616_v24 = vpop.eup %2615 }
 0x311   : > { %1660 = vxpose.xlu0.b32.start [1/3] (short) %v1657_v1, 128  ;;  %v1653_v39 = vmul.f32 %v2616_v24, %v1644_v5 }
 0x312   : > { %v2618_v3 = vpop.eup %2617  ;;  %1726 = vxpose.xlu2.b32.end [3/3] (short) %v1641_v47, 128 }
 0x313   : > { %v1652_v7 = vmul.f32 %v2618_v3, %v1643_v2  ;;  %v1656_v52 = vmul.f32 %v2780_v20, %v1653_v39 }
 0x315   : > { %v1655_v9 = vmul.f32 %v2784_v27, %v1652_v7  ;;  %v1659_v10 = vadd.f32 %v1656_v52, %v1640_v51 }
 0x317   : > { %v1658_v18 = vadd.f32 %v1655_v9, %v1638_v56 }
 0x319   : > { %1661 = vxpose.xlu0.b32.cont [2/3] (short) %v1658_v18, 128 }
 0x321   : > { %1662 = vxpose.xlu0.b32.end [3/3] (short) %v1659_v10, 128 }
 0x390   : > { %v1708_v27 = vpop.trf.xlu1 }
 0x391   : > { %1773 = vst.msk [vmem:[%s2754_s24 + $0x80] sm:$0xff] %vm1756_vm15, %v1708_v27 }
 0x398   : > { %v1709_v20 = vpop.trf.xlu1 }
 0x399   : > { %1774 = vst.msk [vmem:[%s2754_s24 + $0x88] sm:$0xff] %vm1756_vm15, %v1709_v20 }
 0x39b   : > { %v1740_v16 = vpop.trf.xlu2 }
 0x39c   : > { %1789 = vst.msk [vmem:[%s2754_s24 + $0x100] sm:$0xff] %vm1756_vm15, %v1740_v16 }
 0x3a0   : > { %v1710_v15 = vpop.trf.xlu1 }
 0x3a1   : > { %1775 = vst.msk [vmem:[%s2754_s24 + $0x90] sm:$0xff] %vm1756_vm15, %v1710_v15 }
 0x3a3   : > { %v1741_v12 = vpop.trf.xlu2 }
 0x3a4   : > { %1790 = vst.msk [vmem:[%s2754_s24 + $0x108] sm:$0xff] %vm1756_vm15, %v1741_v12 }
 0x3a8   : > { %v1711_v19 = vpop.trf.xlu1 }
 0x3a9   : > { %1776 = vst.msk [vmem:[%s2754_s24 + $0x98] sm:$0xff] %vm1756_vm15, %v1711_v19 }
 0x3ab   : > { %v1742_v53 = vpop.trf.xlu2 }
 0x3ac   : > { %1791 = vst.msk [vmem:[%s2754_s24 + $0x110] sm:$0xff] %vm1756_vm15, %v1742_v53 }
 0x3b0   : > { %v1712_v22 = vpop.trf.xlu1 }
 0x3b1   : > { %1777 = vst.msk [vmem:[%s2754_s24 + $0xa0] sm:$0xff] %vm1756_vm15, %v1712_v22 }
 0x3b3   : > { %v1743_v13 = vpop.trf.xlu2 }
 0x3b4   : > { %1792 = vst.msk [vmem:[%s2754_s24 + $0x118] sm:$0xff] %vm1756_vm15, %v1743_v13 }
 0x3b5   : > { %v1676_v32 = vpop.trf.xlu0 }
 0x3b6   : > { %1757 = vst.msk [vmem:[%s2754_s24] sm:$0xff] %vm1756_vm15, %v1676_v32 }
 0x3b8   : > { %v1713_v29 = vpop.trf.xlu1 }
 0x3b9   : > { %1778 = vst.msk [vmem:[%s2754_s24 + $0xa8] sm:$0xff] %vm1756_vm15, %v1713_v29 }
 0x3bb   : > { %v1744_v33 = vpop.trf.xlu2 }
 0x3bc   : > { %1793 = vst.msk [vmem:[%s2754_s24 + $0x120] sm:$0xff] %vm1756_vm15, %v1744_v33 }
 0x3bd   : > { %v1677_v17 = vpop.trf.xlu0 }
 0x3be   : > { %1758 = vst.msk [vmem:[%s2754_s24 + $0x8] sm:$0xff] %vm1756_vm15, %v1677_v17 }
 0x3c0   : > { %v1714_v4 = vpop.trf.xlu1 }
 0x3c1   : > { %1779 = vst.msk [vmem:[%s2754_s24 + $0xb0] sm:$0xff] %vm1756_vm15, %v1714_v4 }
 0x3c3   : > { %v1745_v57 = vpop.trf.xlu2 }
 0x3c4   : > { %1794 = vst.msk [vmem:[%s2754_s24 + $0x128] sm:$0xff] %vm1756_vm15, %v1745_v57 }
 0x3c5   : > { %v1678_v0 = vpop.trf.xlu0 }
 0x3c6   : > { %1759 = vst.msk [vmem:[%s2754_s24 + $0x10] sm:$0xff] %vm1756_vm15, %v1678_v0 }
 0x3c8   : > { %v1715_v36 = vpop.trf.xlu1 }
 0x3c9   : > { %1780 = vst.msk [vmem:[%s2754_s24 + $0xb8] sm:$0xff] %vm1756_vm15, %v1715_v36 }
 0x3cb   : > { %v1746_v25 = vpop.trf.xlu2 }
 0x3cc   : > { %1795 = vst.msk [vmem:[%s2754_s24 + $0x130] sm:$0xff] %vm1756_vm15, %v1746_v25 }
 0x3cd   : > { %v1679_v23 = vpop.trf.xlu0 }
 0x3ce   : > { %1760 = vst.msk [vmem:[%s2754_s24 + $0x18] sm:$0xff] %vm1756_vm15, %v1679_v23 }
 0x3d0   : > { %v1716_v40 = vpop.trf.xlu1 }
 0x3d1   : > { %1781 = vst.msk [vmem:[%s2754_s24 + $0xc0] sm:$0xff] %vm1756_vm15, %v1716_v40 }
 0x3d3   : > { %v1747_v31 = vpop.trf.xlu2 }
 0x3d4   : > { %1796 = vst.msk [vmem:[%s2754_s24 + $0x138] sm:$0xff] %vm1756_vm15, %v1747_v31 }
 0x3d5   : > { %v1680_v34 = vpop.trf.xlu0 }
 0x3d6   : > { %1761 = vst.msk [vmem:[%s2754_s24 + $0x20] sm:$0xff] %vm1756_vm15, %v1680_v34 }
 0x3d8   : > { %v1717_v11 = vpop.trf.xlu1 }
 0x3d9   : > { %1782 = vst.msk [vmem:[%s2754_s24 + $0xc8] sm:$0xff] %vm1756_vm15, %v1717_v11 }
 0x3db   : > { %v1748_v6 = vpop.trf.xlu2 }
 0x3dc   : > { %1797 = vst.msk [vmem:[%s2754_s24 + $0x140] sm:$0xff] %vm1756_vm15, %v1748_v6 }
 0x3dd   : > { %v1681_v35 = vpop.trf.xlu0 }
 0x3de   : > { %1762 = vst.msk [vmem:[%s2754_s24 + $0x28] sm:$0xff] %vm1756_vm15, %v1681_v35 }
 0x3e0   : > { %v1718_v45 = vpop.trf.xlu1 }
 0x3e1   : > { %1783 = vst.msk [vmem:[%s2754_s24 + $0xd0] sm:$0xff] %vm1756_vm15, %v1718_v45 }
 0x3e3   : > { %v1749_v37 = vpop.trf.xlu2 }
 0x3e4   : > { %1798 = vst.msk [vmem:[%s2754_s24 + $0x148] sm:$0xff] %vm1756_vm15, %v1749_v37 }
 0x3e5   : > { %v1682_v38 = vpop.trf.xlu0 }
 0x3e6   : > { %1763 = vst.msk [vmem:[%s2754_s24 + $0x30] sm:$0xff] %vm1756_vm15, %v1682_v38 }
 0x3e8   : > { %v1719_v14 = vpop.trf.xlu1 }
 0x3e9   : > { %1784 = vst.msk [vmem:[%s2754_s24 + $0xd8] sm:$0xff] %vm1756_vm15, %v1719_v14 }
 0x3eb   : > { %v1750_v41 = vpop.trf.xlu2 }
 0x3ec   : > { %1799 = vst.msk [vmem:[%s2754_s24 + $0x150] sm:$0xff] %vm1756_vm15, %v1750_v41 }
 0x3ed   : > { %v1683_v26 = vpop.trf.xlu0 }
 0x3ee   : > { %1764 = vst.msk [vmem:[%s2754_s24 + $0x38] sm:$0xff] %vm1756_vm15, %v1683_v26 }
 0x3f0   : > { %v1720_v43 = vpop.trf.xlu1 }
 0x3f1   : > { %1785 = vst.msk [vmem:[%s2754_s24 + $0xe0] sm:$0xff] %vm1756_vm15, %v1720_v43 }
 0x3f3   : > { %v1751_v8 = vpop.trf.xlu2 }
 0x3f4   : > { %1800 = vst.msk [vmem:[%s2754_s24 + $0x158] sm:$0xff] %vm1756_vm15, %v1751_v8 }
 0x3f5   : > { %v1684_v42 = vpop.trf.xlu0 }
 0x3f6   : > { %1765 = vst.msk [vmem:[%s2754_s24 + $0x40] sm:$0xff] %vm1756_vm15, %v1684_v42 }
 0x3f8   : > { %v1721_v49 = vpop.trf.xlu1 }
 0x3f9   : > { %1786 = vst.msk [vmem:[%s2754_s24 + $0xe8] sm:$0xff] %vm1756_vm15, %v1721_v49 }
 0x3fb   : > { %v1752_v28 = vpop.trf.xlu2 }
 0x3fc   : > { %1801 = vst.msk [vmem:[%s2754_s24 + $0x160] sm:$0xff] %vm1756_vm15, %v1752_v28 }
 0x3fd   : > { %v1685_v46 = vpop.trf.xlu0 }
 0x3fe   : > { %1766 = vst.msk [vmem:[%s2754_s24 + $0x48] sm:$0xff] %vm1756_vm15, %v1685_v46 }
 0x400   : > { %v1722_v55 = vpop.trf.xlu1 }
 0x401   : > { %1787 = vst.msk [vmem:[%s2754_s24 + $0xf0] sm:$0xff] %vm1756_vm15, %v1722_v55 }
 0x403   : > { %v1753_v21 = vpop.trf.xlu2 }
 0x404   : > { %1802 = vst.msk [vmem:[%s2754_s24 + $0x168] sm:$0xff] %vm1756_vm15, %v1753_v21 }
 0x405   : > { %v1686_v30 = vpop.trf.xlu0 }
 0x406   : > { %1767 = vst.msk [vmem:[%s2754_s24 + $0x50] sm:$0xff] %vm1756_vm15, %v1686_v30 }
 0x408   : > { %v1723_v58 = vpop.trf.xlu1 }
 0x409   : > { %1788 = vst.msk [vmem:[%s2754_s24 + $0xf8] sm:$0xff] %vm1756_vm15, %v1723_v58 }
 0x40b   : > { %v1754_v47 = vpop.trf.xlu2 }
 0x40c   : > { %1803 = vst.msk [vmem:[%s2754_s24 + $0x170] sm:$0xff] %vm1756_vm15, %v1754_v47 }
 0x40d   : > { %v1687_v48 = vpop.trf.xlu0 }
 0x40e   : > { %1768 = vst.msk [vmem:[%s2754_s24 + $0x58] sm:$0xff] %vm1756_vm15, %v1687_v48 }
 0x413   : > { %v1755_v50 = vpop.trf.xlu2 }
 0x414   : > { %1804 = vst.msk [vmem:[%s2754_s24 + $0x178] sm:$0xff] %vm1756_vm15, %v1755_v50 }
 0x415   : > { %v1688_v54 = vpop.trf.xlu0 }
 0x416   : > { %1769 = vst.msk [vmem:[%s2754_s24 + $0x60] sm:$0xff] %vm1756_vm15, %v1688_v54 }
 0x41d   : > { %v1689_v56 = vpop.trf.xlu0 }
 0x41e   : > { %1770 = vst.msk [vmem:[%s2754_s24 + $0x68] sm:$0xff] %vm1756_vm15, %v1689_v56 }
 0x425   : > { %v1690_v59 = vpop.trf.xlu0 }
 0x426   : > { %1771 = vst.msk [vmem:[%s2754_s24 + $0x70] sm:$0xff] %vm1756_vm15, %v1690_v59 }
 0x42d   : > { %v1691_v44 = vpop.trf.xlu0 }
 0x42e   : > { %1772 = vst.msk [vmem:[%s2754_s24 + $0x78] sm:$0xff] %vm1756_vm15, %v1691_v44 }
 0x42f PF: > { %s22_s17 = sadd.s32 1, %s2648_s17  }
 0x430   : > { %p19_p8 = scmp.ge.s32.totalorder %s22_s17, 4  }
 0x432   :  { %21 = sbr.rel (!%p19_p8) target bundleno = 1 (0x1), region = 127 }
 0x437   :  { %1826 = vsyncpa [#allocation5], 1 }
 0x438   :  { %1828 = vsyncpa [#allocation5 + $0x1], 1 }

</bundles_post_ra>
